<compile_context>
chip_gen: v7x
topology: tpu7x:2x2x1
jax: 0.10.0
libtpu: 0.0.40
codegen_flags: <defaults>
</compile_context>

<pallas_src>
import functools

import numpy as np
import jax
import jax.numpy as jnp
from jax import lax
from jax.experimental import pallas as pl
from jax.experimental.pallas import tpu as pltpu

# ----------------------------------------------------------------------------
# Architecture constants (input 10x10, as in the PyTorch default input_shape)
# ----------------------------------------------------------------------------
IN_HW = 10            # raw input spatial size
RS = 56               # bilinear upsample target (56x56)
H1 = RS - 2           # 54: conv1 (k=3, valid) output
P1 = H1 // 2          # 27: maxpool 2x2
H2 = P1 - 2           # 25: conv2 (k=3) output
P2 = H2 // 2          # 12: maxpool 2x2 (floor)
H3 = P2 - 1           # 11: conv3 (k=2) output
C1, C2, C3 = 32, 64, 64
FC1 = 128
FLAT = H3 * H3 * C3   # 7744, matches torch _get_flat_features()


# ----------------------------------------------------------------------------
# The fused Pallas kernel (one batch element per grid step)
# ----------------------------------------------------------------------------
def _vanilla_cnn_kernel(xt_ref, m_ref, hmat_ref, b1_ref,
                        w2_ref, b2_ref, w3_ref, b3_ref,
                        s1e_ref, s1o_ref, s2e_ref, s2o_ref,
                        wfc1_ref, bfc1_ref, wfc2_ref, bfc2_ref,
                        out_ref,
                        a1, p1s, a2, p2s, a3):
    """Activations are stored in VMEM scratch as (H*W, C) slabs
    (rows = (h, w) row-major, lanes = channels)."""
    f32 = jnp.float32
    xt = xt_ref[0]                                   # (10, 10) == x[b]^T

    # --- bilinear resize folded into conv1 (3x3, Cin=1) + ReLU ---------------
    # out1[ho, wo, c] = relu(b1 + sum_dj M[dj:dj+54] @ (x^T @ Hmat[ho, dj]))
    @pl.loop(0, H1)
    def _(ho):
        acc = jnp.zeros((H1, C1), f32)
        for dj in range(3):
            hm = hmat_ref[ho * 3 + dj]                               # (10, C1)
            kq = jnp.dot(xt, hm, preferred_element_type=f32)         # (10, C1)
            acc = acc + jnp.dot(m_ref[dj:dj + H1, :], kq,
                                preferred_element_type=f32)          # (H1, C1)
        a1[pl.ds(ho * H1, H1), :] = jnp.maximum(acc + b1_ref[...], 0.0)

    # --- maxpool 2x2: 54 -> 27 (even/odd column picks via 0/1 matmuls) -------
    @pl.loop(0, P1)
    def _(ho):
        r0 = a1[pl.ds((2 * ho) * H1, H1), :]
        r1 = a1[pl.ds((2 * ho + 1) * H1, H1), :]
        m = jnp.maximum(r0, r1)                                      # (H1, C1)
        pe = jnp.dot(s1e_ref[...], m, preferred_element_type=f32)
        po = jnp.dot(s1o_ref[...], m, preferred_element_type=f32)
        p1s[pl.ds(ho * P1, P1), :] = jnp.maximum(pe, po)

    # --- conv2 3x3 (27 -> 25) + ReLU, one output row per iteration -----------
    @pl.loop(0, H2)
    def _(ho):
        acc = jnp.zeros((H2, C2), f32)
        for di in range(3):
            for dj in range(3):
                slab = p1s[pl.ds((ho + di) * P1 + dj, H2), :]        # (H2, C1)
                acc = acc + jnp.dot(slab, w2_ref[di * 3 + dj],
                                    preferred_element_type=f32)
        a2[pl.ds(ho * H2, H2), :] = jnp.maximum(acc + b2_ref[...], 0.0)

    # --- maxpool 2x2: 25 -> 12 (floor; last row/col dropped) ------------------
    @pl.loop(0, P2)
    def _(ho):
        r0 = a2[pl.ds((2 * ho) * H2, H2), :]
        r1 = a2[pl.ds((2 * ho + 1) * H2, H2), :]
        m = jnp.maximum(r0, r1)                                      # (H2, C2)
        pe = jnp.dot(s2e_ref[...], m, preferred_element_type=f32)
        po = jnp.dot(s2o_ref[...], m, preferred_element_type=f32)
        p2s[pl.ds(ho * P2, P2), :] = jnp.maximum(pe, po)

    # --- conv3 2x2 (12 -> 11) + ReLU ------------------------------------------
    @pl.loop(0, H3)
    def _(ho):
        acc = jnp.zeros((H3, C3), f32)
        for di in range(2):
            for dj in range(2):
                slab = p2s[pl.ds((ho + di) * P2 + dj, H3), :]        # (H3, C2)
                acc = acc + jnp.dot(slab, w3_ref[di * 2 + dj],
                                    preferred_element_type=f32)
        a3[pl.ds(ho * H3, H3), :] = jnp.maximum(acc + b3_ref[...], 0.0)

    # --- flatten (h, w, c order) + fc1 + ReLU + fc2 (dropouts are no-ops) -----
    def fc1_body(r, y):
        row = a3[pl.ds(r, 1), :]                                     # (1, C3)
        return y + jnp.dot(row, wfc1_ref[r], preferred_element_type=f32)

    y = lax.fori_loop(0, H3 * H3, fc1_body, jnp.zeros((1, FC1), jnp.float32))
    h = jnp.maximum(y + bfc1_ref[...], 0.0)                          # (1, FC1)
    logits = jnp.dot(h, wfc2_ref[...], preferred_element_type=f32) + bfc2_ref[...]
    out_ref[0] = logits


# ----------------------------------------------------------------------------
# Host-side constant builders (deterministic, numpy)
# ----------------------------------------------------------------------------
def _bilinear_matrix(out_size, in_size):
    """PyTorch bilinear Upsample (align_corners=False) as a (out, in) matrix."""
    scale = in_size / out_size
    m = np.zeros((out_size, in_size), np.float32)
    for o in range(out_size):
        src = (o + 0.5) * scale - 0.5
        if src < 0.0:
            src = 0.0
        i0 = int(np.floor(src))
        i0 = min(i0, in_size - 1)
        frac = src - i0
        i1 = min(i0 + 1, in_size - 1)
        m[o, i0] += 1.0 - frac
        m[o, i1] += frac
    return m


def _pool_select(out_w, in_w, off):
    """0/1 matrix picking columns 2*i + off (exact stride-2 subsample)."""
    s = np.zeros((out_w, in_w), np.float32)
    s[np.arange(out_w), 2 * np.arange(out_w) + off] = 1.0
    return s


# ----------------------------------------------------------------------------
# Parameter init (PyTorch Conv2d/Linear-style uniform bounds) and prep
# ----------------------------------------------------------------------------
def init_params(key, num_classes=10):
    ks = jax.random.split(key, 10)

    def uni(k, shape, fan_in):
        b = float(1.0 / np.sqrt(fan_in))
        return jax.random.uniform(k, shape, jnp.float32, -b, b)

    return dict(
        w1=uni(ks[0], (3, 3, C1), 9),              # conv1 (kh, kw, cout), Cin=1
        b1=uni(ks[1], (C1,), 9),
        w2=uni(ks[2], (3, 3, C1, C2), 3 * 3 * C1),  # conv2 HWIO
        b2=uni(ks[3], (C2,), 3 * 3 * C1),
        w3=uni(ks[4], (2, 2, C2, C3), 2 * 2 * C2),  # conv3 HWIO
        b3=uni(ks[5], (C3,), 2 * 2 * C2),
        wfc1=uni(ks[6], (FLAT, FC1), FLAT),         # NHWC-flatten order
        bfc1=uni(ks[7], (FC1,), FLAT),
        wfc2=uni(ks[8], (FC1, num_classes), FC1),
        bfc2=uni(ks[9], (num_classes,), FC1),
    )


def prepare_params(p):
    """Fold resize into conv1, reshape weights for the kernel (param prep)."""
    m = jnp.asarray(_bilinear_matrix(RS, IN_HW))                     # (56, 10)
    mstack = jnp.stack([m[d:d + H1, :] for d in range(3)], axis=1)   # (54, 3, 10)
    # Hmat[ho, dj, p, c] = sum_di M[ho+di, p] * w1[di, dj, c]
    hmat = jnp.einsum('hip,ijc->hjpc', mstack, p['w1']).reshape(H1 * 3, IN_HW, C1)
    return dict(
        m=m,
        hmat=hmat,
        b1=p['b1'].reshape(1, C1),
        w2=p['w2'].reshape(9, C1, C2),
        b2=p['b2'].reshape(1, C2),
        w3=p['w3'].reshape(4, C2, C3),
        b3=p['b3'].reshape(1, C3),
        s1e=jnp.asarray(_pool_select(P1, H1, 0)),
        s1o=jnp.asarray(_pool_select(P1, H1, 1)),
        s2e=jnp.asarray(_pool_select(P2, H2, 0)),
        s2o=jnp.asarray(_pool_select(P2, H2, 1)),
        wfc1=p['wfc1'].reshape(H3 * H3, C3, FC1),
        bfc1=p['bfc1'].reshape(1, FC1),
        wfc2=p['wfc2'],
        bfc2=p['bfc2'].reshape(1, -1),
    )


# ----------------------------------------------------------------------------
# Forward pass: one fused pallas_call, grid=(B,) (parallel across TCs on v7x)
# ----------------------------------------------------------------------------
def model_forward(prep, x):
    if x.ndim == 4:                    # (B, 1, H, W) -> (B, H, W)
        x = x[:, 0]
    bsz = x.shape[0]
    nc = prep['wfc2'].shape[1]
    xt = jnp.swapaxes(x, 1, 2)         # layout plumbing for the folded conv1

    def full(a):                       # whole-array VMEM-resident operand
        return pl.BlockSpec(a.shape, lambda b, _nd=a.ndim: (0,) * _nd)

    operands = (xt, prep['m'], prep['hmat'], prep['b1'],
                prep['w2'], prep['b2'], prep['w3'], prep['b3'],
                prep['s1e'], prep['s1o'], prep['s2e'], prep['s2o'],
                prep['wfc1'], prep['bfc1'], prep['wfc2'], prep['bfc2'])

    in_specs = ([pl.BlockSpec((1, IN_HW, IN_HW), lambda b: (b, 0, 0))]
                + [full(a) for a in operands[1:]])

    out = pl.pallas_call(
        _vanilla_cnn_kernel,
        out_shape=jax.ShapeDtypeStruct((bsz, 1, nc), jnp.float32),
        grid=(bsz,),
        in_specs=in_specs,
        out_specs=pl.BlockSpec((1, 1, nc), lambda b: (b, 0, 0)),
        scratch_shapes=[
            pltpu.VMEM((H1 * H1, C1), jnp.float32),   # conv1 out
            pltpu.VMEM((P1 * P1, C1), jnp.float32),   # pool1 out
            pltpu.VMEM((H2 * H2, C2), jnp.float32),   # conv2 out
            pltpu.VMEM((P2 * P2, C2), jnp.float32),   # pool2 out
            pltpu.VMEM((H3 * H3, C3), jnp.float32),   # conv3 out
        ],
        compiler_params=pltpu.CompilerParams(
            dimension_semantics=("parallel",)),
    )(*operands)
    return out.reshape(bsz, nc)


# ----------------------------------------------------------------------------
# Pure-JAX reference (same math, XLA ops) for a self-check
# ----------------------------------------------------------------------------
def reference_forward(params, x):
    if x.ndim == 4:
        x = x[:, 0]
    hi = lax.Precision.HIGHEST
    m = jnp.asarray(_bilinear_matrix(RS, IN_HW))
    r = jnp.einsum('hp,bpq,wq->bhw', m, x, m, precision=hi)[..., None]
    dn = ('NHWC', 'HWIO', 'NHWC')

    def conv(v, w, b):
        y = lax.conv_general_dilated(v, w, (1, 1), 'VALID',
                                     dimension_numbers=dn, precision=hi)
        return jnp.maximum(y + b, 0.0)

    def pool(v):
        return lax.reduce_window(v, -jnp.inf, lax.max,
                                 (1, 2, 2, 1), (1, 2, 2, 1), 'VALID')

    y = pool(conv(r, params['w1'][:, :, None, :], params['b1']))
    y = pool(conv(y, params['w2'], params['b2']))
    y = conv(y, params['w3'], params['b3'])
    flat = y.reshape(y.shape[0], -1)
    h = jnp.maximum(jnp.dot(flat, params['wfc1'], precision=hi)
                    + params['bfc1'], 0.0)
    return jnp.dot(h, params['wfc2'], precision=hi) + params['bfc2']


# ----------------------------------------------------------------------------
if __name__ == "__main__":
    B = 2
    NUM_CLASSES = 10

    key = jax.random.PRNGKey(0)
    kp, kx = jax.random.split(key)
    params = init_params(kp, NUM_CLASSES)
    prep = prepare_params(params)
    x = jax.random.normal(kx, (B, IN_HW, IN_HW), jnp.float32)

    fwd = jax.jit(model_forward)
    logits = fwd(prep, x)
    jax.block_until_ready(logits)

    assert logits.shape == (B, NUM_CLASSES), logits.shape
    assert bool(jnp.all(jnp.isfinite(logits)))

    ref = reference_forward(params, x)
    assert jnp.allclose(logits, ref, rtol=5e-2, atol=2e-2)

    print("KERNEL_OK")
</pallas_src>

<mosaic_0001>
module attributes {stable_mosaic.version = 11 : i64} {
  func.func @_vanilla_cnn_kernel(%arg0: i32, %arg1: memref<1x10x10xf32, #tpu.memory_space<vmem>>, %arg2: memref<56x10xf32, #tpu.memory_space<vmem>>, %arg3: memref<162x10x32xf32, #tpu.memory_space<vmem>>, %arg4: memref<1x32xf32, #tpu.memory_space<vmem>>, %arg5: memref<9x32x64xf32, #tpu.memory_space<vmem>>, %arg6: memref<1x64xf32, #tpu.memory_space<vmem>>, %arg7: memref<4x64x64xf32, #tpu.memory_space<vmem>>, %arg8: memref<1x64xf32, #tpu.memory_space<vmem>>, %arg9: memref<27x54xf32, #tpu.memory_space<vmem>>, %arg10: memref<27x54xf32, #tpu.memory_space<vmem>>, %arg11: memref<12x25xf32, #tpu.memory_space<vmem>>, %arg12: memref<12x25xf32, #tpu.memory_space<vmem>>, %arg13: memref<121x64x128xf32, #tpu.memory_space<vmem>>, %arg14: memref<1x128xf32, #tpu.memory_space<vmem>>, %arg15: memref<128x10xf32, #tpu.memory_space<vmem>>, %arg16: memref<1x10xf32, #tpu.memory_space<vmem>>, %arg17: memref<1x1x10xf32, #tpu.memory_space<vmem>>, %arg18: memref<2916x32xf32, #tpu.memory_space<vmem>>, %arg19: memref<729x32xf32, #tpu.memory_space<vmem>>, %arg20: memref<625x64xf32, #tpu.memory_space<vmem>>, %arg21: memref<144x64xf32, #tpu.memory_space<vmem>>, %arg22: memref<121x64xf32, #tpu.memory_space<vmem>>) attributes {dimension_semantics = [#tpu.dimension_semantics<parallel>], iteration_bounds = array<i64: 2>, scalar_prefetch = 0 : i64, scratch_operands = 5 : i64, tpu.core_type = #tpu.core_type<tc>, window_params = [{transform_indices = @transform_0, window_bounds = array<i64: 1, 10, 10>}, {pipeline_mode = #tpu.pipeline_mode<synchronous>, transform_indices = @transform_1, window_bounds = array<i64: 56, 10>}, {pipeline_mode = #tpu.pipeline_mode<synchronous>, transform_indices = @transform_2, window_bounds = array<i64: 162, 10, 32>}, {pipeline_mode = #tpu.pipeline_mode<synchronous>, transform_indices = @transform_3, window_bounds = array<i64: 1, 32>}, {pipeline_mode = #tpu.pipeline_mode<synchronous>, transform_indices = @transform_4, window_bounds = array<i64: 9, 32, 64>}, {pipeline_mode = #tpu.pipeline_mode<synchronous>, transform_indices = @transform_5, window_bounds = array<i64: 1, 64>}, {pipeline_mode = #tpu.pipeline_mode<synchronous>, transform_indices = @transform_6, window_bounds = array<i64: 4, 64, 64>}, {pipeline_mode = #tpu.pipeline_mode<synchronous>, transform_indices = @transform_7, window_bounds = array<i64: 1, 64>}, {pipeline_mode = #tpu.pipeline_mode<synchronous>, transform_indices = @transform_8, window_bounds = array<i64: 27, 54>}, {pipeline_mode = #tpu.pipeline_mode<synchronous>, transform_indices = @transform_9, window_bounds = array<i64: 27, 54>}, {pipeline_mode = #tpu.pipeline_mode<synchronous>, transform_indices = @transform_10, window_bounds = array<i64: 12, 25>}, {pipeline_mode = #tpu.pipeline_mode<synchronous>, transform_indices = @transform_11, window_bounds = array<i64: 12, 25>}, {pipeline_mode = #tpu.pipeline_mode<synchronous>, transform_indices = @transform_12, window_bounds = array<i64: 121, 64, 128>}, {pipeline_mode = #tpu.pipeline_mode<synchronous>, transform_indices = @transform_13, window_bounds = array<i64: 1, 128>}, {pipeline_mode = #tpu.pipeline_mode<synchronous>, transform_indices = @transform_14, window_bounds = array<i64: 128, 10>}, {pipeline_mode = #tpu.pipeline_mode<synchronous>, transform_indices = @transform_15, window_bounds = array<i64: 1, 10>}, {transform_indices = @transform_16, window_bounds = array<i64: 1, 1, 10>}]} {
    %c0 = arith.constant 0 : index
    %c0_0 = arith.constant 0 : index
    %c0_1 = arith.constant 0 : index
    %0 = vector.load %arg1[%c0, %c0_0, %c0_1] : memref<1x10x10xf32, #tpu.memory_space<vmem>>, vector<1x10x10xf32>
    %1 = vector.shape_cast %0 : vector<1x10x10xf32> to vector<10x10xf32>
    %c0_i32 = arith.constant 0 : i32
    %c54_i32 = arith.constant 54 : i32
    %2 = arith.addi %c0_i32, %c54_i32 : i32
    %c1_i32 = arith.constant 1 : i32
    scf.for %arg23 = %c0_i32 to %2 step %c1_i32  : i32 {
      %c1_i32_29 = arith.constant 1 : i32
      %21 = arith.muli %arg23, %c1_i32_29 : i32
      %c0_i32_30 = arith.constant 0 : i32
      %22 = arith.addi %c0_i32_30, %21 : i32
      %cst_31 = arith.constant 0.000000e+00 : f32
      %23 = vector.broadcast %cst_31 : f32 to vector<54x32xf32>
      %c3_i32 = arith.constant 3 : i32
      %24 = arith.muli %22, %c3_i32 : i32
      %c0_i32_32 = arith.constant 0 : i32
      %25 = arith.addi %24, %c0_i32_32 : i32
      %26 = arith.index_cast %25 : i32 to index
      %c0_33 = arith.constant 0 : index
      %c0_34 = arith.constant 0 : index
      %27 = vector.load %arg3[%26, %c0_33, %c0_34] : memref<162x10x32xf32, #tpu.memory_space<vmem>>, vector<1x10x32xf32>
      %28 = vector.shape_cast %27 : vector<1x10x32xf32> to vector<10x32xf32>
      %cst_35 = arith.constant dense<0.000000e+00> : vector<10x32xf32>
      %29 = tpu.matmul %1, %28, %cst_35 {dimension_numbers = #tpu.dot_dimension_numbers<[1], [0], [0], [1], [0, 0, 1, 1], [], []>} : vector<10x10xf32>, vector<10x32xf32>, vector<10x32xf32> -> vector<10x32xf32>
      %c0_36 = arith.constant 0 : index
      %c0_37 = arith.constant 0 : index
      %30 = vector.load %arg2[%c0_36, %c0_37] : memref<56x10xf32, #tpu.memory_space<vmem>>, vector<54x10xf32>
      %cst_38 = arith.constant dense<0.000000e+00> : vector<54x32xf32>
      %31 = tpu.matmul %30, %29, %cst_38 {dimension_numbers = #tpu.dot_dimension_numbers<[1], [0], [0], [1], [0, 0, 1, 1], [], []>} : vector<54x10xf32>, vector<10x32xf32>, vector<54x32xf32> -> vector<54x32xf32>
      %32 = arith.addf %23, %31 : vector<54x32xf32>
      %c3_i32_39 = arith.constant 3 : i32
      %33 = arith.muli %22, %c3_i32_39 : i32
      %c1_i32_40 = arith.constant 1 : i32
      %34 = arith.addi %33, %c1_i32_40 : i32
      %35 = arith.index_cast %34 : i32 to index
      %c0_41 = arith.constant 0 : index
      %c0_42 = arith.constant 0 : index
      %36 = vector.load %arg3[%35, %c0_41, %c0_42] : memref<162x10x32xf32, #tpu.memory_space<vmem>>, vector<1x10x32xf32>
      %37 = vector.shape_cast %36 : vector<1x10x32xf32> to vector<10x32xf32>
      %cst_43 = arith.constant dense<0.000000e+00> : vector<10x32xf32>
      %38 = tpu.matmul %1, %37, %cst_43 {dimension_numbers = #tpu.dot_dimension_numbers<[1], [0], [0], [1], [0, 0, 1, 1], [], []>} : vector<10x10xf32>, vector<10x32xf32>, vector<10x32xf32> -> vector<10x32xf32>
      %c1 = arith.constant 1 : index
      %c0_44 = arith.constant 0 : index
      %39 = vector.load %arg2[%c1, %c0_44] : memref<56x10xf32, #tpu.memory_space<vmem>>, vector<54x10xf32>
      %cst_45 = arith.constant dense<0.000000e+00> : vector<54x32xf32>
      %40 = tpu.matmul %39, %38, %cst_45 {dimension_numbers = #tpu.dot_dimension_numbers<[1], [0], [0], [1], [0, 0, 1, 1], [], []>} : vector<54x10xf32>, vector<10x32xf32>, vector<54x32xf32> -> vector<54x32xf32>
      %41 = arith.addf %32, %40 : vector<54x32xf32>
      %c3_i32_46 = arith.constant 3 : i32
      %42 = arith.muli %22, %c3_i32_46 : i32
      %c2_i32 = arith.constant 2 : i32
      %43 = arith.addi %42, %c2_i32 : i32
      %44 = arith.index_cast %43 : i32 to index
      %c0_47 = arith.constant 0 : index
      %c0_48 = arith.constant 0 : index
      %45 = vector.load %arg3[%44, %c0_47, %c0_48] : memref<162x10x32xf32, #tpu.memory_space<vmem>>, vector<1x10x32xf32>
      %46 = vector.shape_cast %45 : vector<1x10x32xf32> to vector<10x32xf32>
      %cst_49 = arith.constant dense<0.000000e+00> : vector<10x32xf32>
      %47 = tpu.matmul %1, %46, %cst_49 {dimension_numbers = #tpu.dot_dimension_numbers<[1], [0], [0], [1], [0, 0, 1, 1], [], []>} : vector<10x10xf32>, vector<10x32xf32>, vector<10x32xf32> -> vector<10x32xf32>
      %c2 = arith.constant 2 : index
      %c0_50 = arith.constant 0 : index
      %48 = vector.load %arg2[%c2, %c0_50] : memref<56x10xf32, #tpu.memory_space<vmem>>, vector<54x10xf32>
      %cst_51 = arith.constant dense<0.000000e+00> : vector<54x32xf32>
      %49 = tpu.matmul %48, %47, %cst_51 {dimension_numbers = #tpu.dot_dimension_numbers<[1], [0], [0], [1], [0, 0, 1, 1], [], []>} : vector<54x10xf32>, vector<10x32xf32>, vector<54x32xf32> -> vector<54x32xf32>
      %50 = arith.addf %41, %49 : vector<54x32xf32>
      %c0_52 = arith.constant 0 : index
      %c0_53 = arith.constant 0 : index
      %51 = vector.load %arg4[%c0_52, %c0_53] : memref<1x32xf32, #tpu.memory_space<vmem>>, vector<1x32xf32>
      %52 = vector.broadcast %51 : vector<1x32xf32> to vector<54x32xf32>
      %53 = arith.addf %50, %52 : vector<54x32xf32>
      %cst_54 = arith.constant 0.000000e+00 : f32
      %54 = vector.broadcast %cst_54 : f32 to vector<54x32xf32>
      %55 = arith.maximumf %53, %54 : vector<54x32xf32>
      %c54_i32_55 = arith.constant 54 : i32
      %56 = arith.muli %22, %c54_i32_55 : i32
      %57 = arith.index_cast %56 : i32 to index
      %c0_56 = arith.constant 0 : index
      %58 = vector.load %arg18[%57, %c0_56] : memref<2916x32xf32, #tpu.memory_space<vmem>>, vector<54x32xf32>
      tpu.vector_store %arg18[%57, %c0_56], %55 {strides = array<i32>} : memref<2916x32xf32, #tpu.memory_space<vmem>>, vector<54x32xf32>,
    }
    %c54_i32_2 = arith.constant 54 : i32
    %c0_i32_3 = arith.constant 0 : i32
    %c27_i32 = arith.constant 27 : i32
    %3 = arith.addi %c0_i32_3, %c27_i32 : i32
    %c1_i32_4 = arith.constant 1 : i32
    scf.for %arg23 = %c0_i32_3 to %3 step %c1_i32_4  : i32 {
      %c1_i32_29 = arith.constant 1 : i32
      %21 = arith.muli %arg23, %c1_i32_29 : i32
      %c0_i32_30 = arith.constant 0 : i32
      %22 = arith.addi %c0_i32_30, %21 : i32
      %c2_i32 = arith.constant 2 : i32
      %23 = arith.muli %c2_i32, %22 : i32
      %c54_i32_31 = arith.constant 54 : i32
      %24 = arith.muli %23, %c54_i32_31 : i32
      %25 = arith.index_cast %24 : i32 to index
      %c0_32 = arith.constant 0 : index
      %26 = vector.load %arg18[%25, %c0_32] : memref<2916x32xf32, #tpu.memory_space<vmem>>, vector<54x32xf32>
      %c2_i32_33 = arith.constant 2 : i32
      %27 = arith.muli %c2_i32_33, %22 : i32
      %c1_i32_34 = arith.constant 1 : i32
      %28 = arith.addi %27, %c1_i32_34 : i32
      %c54_i32_35 = arith.constant 54 : i32
      %29 = arith.muli %28, %c54_i32_35 : i32
      %30 = arith.index_cast %29 : i32 to index
      %c0_36 = arith.constant 0 : index
      %31 = vector.load %arg18[%30, %c0_36] : memref<2916x32xf32, #tpu.memory_space<vmem>>, vector<54x32xf32>
      %32 = arith.maximumf %26, %31 : vector<54x32xf32>
      %c0_37 = arith.constant 0 : index
      %c0_38 = arith.constant 0 : index
      %33 = vector.load %arg9[%c0_37, %c0_38] : memref<27x54xf32, #tpu.memory_space<vmem>>, vector<27x54xf32>
      %cst_39 = arith.constant dense<0.000000e+00> : vector<27x32xf32>
      %34 = tpu.matmul %33, %32, %cst_39 {dimension_numbers = #tpu.dot_dimension_numbers<[1], [0], [0], [1], [0, 0, 1, 1], [], []>} : vector<27x54xf32>, vector<54x32xf32>, vector<27x32xf32> -> vector<27x32xf32>
      %c0_40 = arith.constant 0 : index
      %c0_41 = arith.constant 0 : index
      %35 = vector.load %arg10[%c0_40, %c0_41] : memref<27x54xf32, #tpu.memory_space<vmem>>, vector<27x54xf32>
      %cst_42 = arith.constant dense<0.000000e+00> : vector<27x32xf32>
      %36 = tpu.matmul %35, %32, %cst_42 {dimension_numbers = #tpu.dot_dimension_numbers<[1], [0], [0], [1], [0, 0, 1, 1], [], []>} : vector<27x54xf32>, vector<54x32xf32>, vector<27x32xf32> -> vector<27x32xf32>
      %37 = arith.maximumf %34, %36 : vector<27x32xf32>
      %c27_i32_43 = arith.constant 27 : i32
      %38 = arith.muli %22, %c27_i32_43 : i32
      %39 = arith.index_cast %38 : i32 to index
      %c0_44 = arith.constant 0 : index
      %40 = vector.load %arg19[%39, %c0_44] : memref<729x32xf32, #tpu.memory_space<vmem>>, vector<27x32xf32>
      tpu.vector_store %arg19[%39, %c0_44], %37 {strides = array<i32>} : memref<729x32xf32, #tpu.memory_space<vmem>>, vector<27x32xf32>,
    }
    %c27_i32_5 = arith.constant 27 : i32
    %c0_i32_6 = arith.constant 0 : i32
    %c25_i32 = arith.constant 25 : i32
    %4 = arith.addi %c0_i32_6, %c25_i32 : i32
    %c1_i32_7 = arith.constant 1 : i32
    scf.for %arg23 = %c0_i32_6 to %4 step %c1_i32_7  : i32 {
      %c1_i32_29 = arith.constant 1 : i32
      %21 = arith.muli %arg23, %c1_i32_29 : i32
      %c0_i32_30 = arith.constant 0 : i32
      %22 = arith.addi %c0_i32_30, %21 : i32
      %cst_31 = arith.constant 0.000000e+00 : f32
      %23 = vector.broadcast %cst_31 : f32 to vector<25x64xf32>
      %c0_i32_32 = arith.constant 0 : i32
      %24 = arith.addi %22, %c0_i32_32 : i32
      %c27_i32_33 = arith.constant 27 : i32
      %25 = arith.muli %24, %c27_i32_33 : i32
      %c0_i32_34 = arith.constant 0 : i32
      %26 = arith.addi %25, %c0_i32_34 : i32
      %27 = arith.index_cast %26 : i32 to index
      %c0_35 = arith.constant 0 : index
      %28 = vector.load %arg19[%27, %c0_35] : memref<729x32xf32, #tpu.memory_space<vmem>>, vector<25x32xf32>
      %c0_36 = arith.constant 0 : index
      %c0_37 = arith.constant 0 : index
      %c0_38 = arith.constant 0 : index
      %29 = vector.load %arg5[%c0_36, %c0_37, %c0_38] : memref<9x32x64xf32, #tpu.memory_space<vmem>>, vector<1x32x64xf32>
      %30 = vector.shape_cast %29 : vector<1x32x64xf32> to vector<32x64xf32>
      %cst_39 = arith.constant dense<0.000000e+00> : vector<25x64xf32>
      %31 = tpu.matmul %28, %30, %cst_39 {dimension_numbers = #tpu.dot_dimension_numbers<[1], [0], [0], [1], [0, 0, 1, 1], [], []>} : vector<25x32xf32>, vector<32x64xf32>, vector<25x64xf32> -> vector<25x64xf32>
      %32 = arith.addf %23, %31 : vector<25x64xf32>
      %c0_i32_40 = arith.constant 0 : i32
      %33 = arith.addi %22, %c0_i32_40 : i32
      %c27_i32_41 = arith.constant 27 : i32
      %34 = arith.muli %33, %c27_i32_41 : i32
      %c1_i32_42 = arith.constant 1 : i32
      %35 = arith.addi %34, %c1_i32_42 : i32
      %36 = arith.index_cast %35 : i32 to index
      %c0_43 = arith.constant 0 : index
      %37 = vector.load %arg19[%36, %c0_43] : memref<729x32xf32, #tpu.memory_space<vmem>>, vector<25x32xf32>
      %c1 = arith.constant 1 : index
      %c0_44 = arith.constant 0 : index
      %c0_45 = arith.constant 0 : index
      %38 = vector.load %arg5[%c1, %c0_44, %c0_45] : memref<9x32x64xf32, #tpu.memory_space<vmem>>, vector<1x32x64xf32>
      %39 = vector.shape_cast %38 : vector<1x32x64xf32> to vector<32x64xf32>
      %cst_46 = arith.constant dense<0.000000e+00> : vector<25x64xf32>
      %40 = tpu.matmul %37, %39, %cst_46 {dimension_numbers = #tpu.dot_dimension_numbers<[1], [0], [0], [1], [0, 0, 1, 1], [], []>} : vector<25x32xf32>, vector<32x64xf32>, vector<25x64xf32> -> vector<25x64xf32>
      %41 = arith.addf %32, %40 : vector<25x64xf32>
      %c0_i32_47 = arith.constant 0 : i32
      %42 = arith.addi %22, %c0_i32_47 : i32
      %c27_i32_48 = arith.constant 27 : i32
      %43 = arith.muli %42, %c27_i32_48 : i32
      %c2_i32 = arith.constant 2 : i32
      %44 = arith.addi %43, %c2_i32 : i32
      %45 = arith.index_cast %44 : i32 to index
      %c0_49 = arith.constant 0 : index
      %46 = vector.load %arg19[%45, %c0_49] : memref<729x32xf32, #tpu.memory_space<vmem>>, vector<25x32xf32>
      %c2 = arith.constant 2 : index
      %c0_50 = arith.constant 0 : index
      %c0_51 = arith.constant 0 : index
      %47 = vector.load %arg5[%c2, %c0_50, %c0_51] : memref<9x32x64xf32, #tpu.memory_space<vmem>>, vector<1x32x64xf32>
      %48 = vector.shape_cast %47 : vector<1x32x64xf32> to vector<32x64xf32>
      %cst_52 = arith.constant dense<0.000000e+00> : vector<25x64xf32>
      %49 = tpu.matmul %46, %48, %cst_52 {dimension_numbers = #tpu.dot_dimension_numbers<[1], [0], [0], [1], [0, 0, 1, 1], [], []>} : vector<25x32xf32>, vector<32x64xf32>, vector<25x64xf32> -> vector<25x64xf32>
      %50 = arith.addf %41, %49 : vector<25x64xf32>
      %c1_i32_53 = arith.constant 1 : i32
      %51 = arith.addi %22, %c1_i32_53 : i32
      %c27_i32_54 = arith.constant 27 : i32
      %52 = arith.muli %51, %c27_i32_54 : i32
      %c0_i32_55 = arith.constant 0 : i32
      %53 = arith.addi %52, %c0_i32_55 : i32
      %54 = arith.index_cast %53 : i32 to index
      %c0_56 = arith.constant 0 : index
      %55 = vector.load %arg19[%54, %c0_56] : memref<729x32xf32, #tpu.memory_space<vmem>>, vector<25x32xf32>
      %c3 = arith.constant 3 : index
      %c0_57 = arith.constant 0 : index
      %c0_58 = arith.constant 0 : index
      %56 = vector.load %arg5[%c3, %c0_57, %c0_58] : memref<9x32x64xf32, #tpu.memory_space<vmem>>, vector<1x32x64xf32>
      %57 = vector.shape_cast %56 : vector<1x32x64xf32> to vector<32x64xf32>
      %cst_59 = arith.constant dense<0.000000e+00> : vector<25x64xf32>
      %58 = tpu.matmul %55, %57, %cst_59 {dimension_numbers = #tpu.dot_dimension_numbers<[1], [0], [0], [1], [0, 0, 1, 1], [], []>} : vector<25x32xf32>, vector<32x64xf32>, vector<25x64xf32> -> vector<25x64xf32>
      %59 = arith.addf %50, %58 : vector<25x64xf32>
      %c1_i32_60 = arith.constant 1 : i32
      %60 = arith.addi %22, %c1_i32_60 : i32
      %c27_i32_61 = arith.constant 27 : i32
      %61 = arith.muli %60, %c27_i32_61 : i32
      %c1_i32_62 = arith.constant 1 : i32
      %62 = arith.addi %61, %c1_i32_62 : i32
      %63 = arith.index_cast %62 : i32 to index
      %c0_63 = arith.constant 0 : index
      %64 = vector.load %arg19[%63, %c0_63] : memref<729x32xf32, #tpu.memory_space<vmem>>, vector<25x32xf32>
      %c4 = arith.constant 4 : index
      %c0_64 = arith.constant 0 : index
      %c0_65 = arith.constant 0 : index
      %65 = vector.load %arg5[%c4, %c0_64, %c0_65] : memref<9x32x64xf32, #tpu.memory_space<vmem>>, vector<1x32x64xf32>
      %66 = vector.shape_cast %65 : vector<1x32x64xf32> to vector<32x64xf32>
      %cst_66 = arith.constant dense<0.000000e+00> : vector<25x64xf32>
      %67 = tpu.matmul %64, %66, %cst_66 {dimension_numbers = #tpu.dot_dimension_numbers<[1], [0], [0], [1], [0, 0, 1, 1], [], []>} : vector<25x32xf32>, vector<32x64xf32>, vector<25x64xf32> -> vector<25x64xf32>
      %68 = arith.addf %59, %67 : vector<25x64xf32>
      %c1_i32_67 = arith.constant 1 : i32
      %69 = arith.addi %22, %c1_i32_67 : i32
      %c27_i32_68 = arith.constant 27 : i32
      %70 = arith.muli %69, %c27_i32_68 : i32
      %c2_i32_69 = arith.constant 2 : i32
      %71 = arith.addi %70, %c2_i32_69 : i32
      %72 = arith.index_cast %71 : i32 to index
      %c0_70 = arith.constant 0 : index
      %73 = vector.load %arg19[%72, %c0_70] : memref<729x32xf32, #tpu.memory_space<vmem>>, vector<25x32xf32>
      %c5 = arith.constant 5 : index
      %c0_71 = arith.constant 0 : index
      %c0_72 = arith.constant 0 : index
      %74 = vector.load %arg5[%c5, %c0_71, %c0_72] : memref<9x32x64xf32, #tpu.memory_space<vmem>>, vector<1x32x64xf32>
      %75 = vector.shape_cast %74 : vector<1x32x64xf32> to vector<32x64xf32>
      %cst_73 = arith.constant dense<0.000000e+00> : vector<25x64xf32>
      %76 = tpu.matmul %73, %75, %cst_73 {dimension_numbers = #tpu.dot_dimension_numbers<[1], [0], [0], [1], [0, 0, 1, 1], [], []>} : vector<25x32xf32>, vector<32x64xf32>, vector<25x64xf32> -> vector<25x64xf32>
      %77 = arith.addf %68, %76 : vector<25x64xf32>
      %c2_i32_74 = arith.constant 2 : i32
      %78 = arith.addi %22, %c2_i32_74 : i32
      %c27_i32_75 = arith.constant 27 : i32
      %79 = arith.muli %78, %c27_i32_75 : i32
      %c0_i32_76 = arith.constant 0 : i32
      %80 = arith.addi %79, %c0_i32_76 : i32
      %81 = arith.index_cast %80 : i32 to index
      %c0_77 = arith.constant 0 : index
      %82 = vector.load %arg19[%81, %c0_77] : memref<729x32xf32, #tpu.memory_space<vmem>>, vector<25x32xf32>
      %c6 = arith.constant 6 : index
      %c0_78 = arith.constant 0 : index
      %c0_79 = arith.constant 0 : index
      %83 = vector.load %arg5[%c6, %c0_78, %c0_79] : memref<9x32x64xf32, #tpu.memory_space<vmem>>, vector<1x32x64xf32>
      %84 = vector.shape_cast %83 : vector<1x32x64xf32> to vector<32x64xf32>
      %cst_80 = arith.constant dense<0.000000e+00> : vector<25x64xf32>
      %85 = tpu.matmul %82, %84, %cst_80 {dimension_numbers = #tpu.dot_dimension_numbers<[1], [0], [0], [1], [0, 0, 1, 1], [], []>} : vector<25x32xf32>, vector<32x64xf32>, vector<25x64xf32> -> vector<25x64xf32>
      %86 = arith.addf %77, %85 : vector<25x64xf32>
      %c2_i32_81 = arith.constant 2 : i32
      %87 = arith.addi %22, %c2_i32_81 : i32
      %c27_i32_82 = arith.constant 27 : i32
      %88 = arith.muli %87, %c27_i32_82 : i32
      %c1_i32_83 = arith.constant 1 : i32
      %89 = arith.addi %88, %c1_i32_83 : i32
      %90 = arith.index_cast %89 : i32 to index
      %c0_84 = arith.constant 0 : index
      %91 = vector.load %arg19[%90, %c0_84] : memref<729x32xf32, #tpu.memory_space<vmem>>, vector<25x32xf32>
      %c7 = arith.constant 7 : index
      %c0_85 = arith.constant 0 : index
      %c0_86 = arith.constant 0 : index
      %92 = vector.load %arg5[%c7, %c0_85, %c0_86] : memref<9x32x64xf32, #tpu.memory_space<vmem>>, vector<1x32x64xf32>
      %93 = vector.shape_cast %92 : vector<1x32x64xf32> to vector<32x64xf32>
      %cst_87 = arith.constant dense<0.000000e+00> : vector<25x64xf32>
      %94 = tpu.matmul %91, %93, %cst_87 {dimension_numbers = #tpu.dot_dimension_numbers<[1], [0], [0], [1], [0, 0, 1, 1], [], []>} : vector<25x32xf32>, vector<32x64xf32>, vector<25x64xf32> -> vector<25x64xf32>
      %95 = arith.addf %86, %94 : vector<25x64xf32>
      %c2_i32_88 = arith.constant 2 : i32
      %96 = arith.addi %22, %c2_i32_88 : i32
      %c27_i32_89 = arith.constant 27 : i32
      %97 = arith.muli %96, %c27_i32_89 : i32
      %c2_i32_90 = arith.constant 2 : i32
      %98 = arith.addi %97, %c2_i32_90 : i32
      %99 = arith.index_cast %98 : i32 to index
      %c0_91 = arith.constant 0 : index
      %100 = vector.load %arg19[%99, %c0_91] : memref<729x32xf32, #tpu.memory_space<vmem>>, vector<25x32xf32>
      %c8 = arith.constant 8 : index
      %c0_92 = arith.constant 0 : index
      %c0_93 = arith.constant 0 : index
      %101 = vector.load %arg5[%c8, %c0_92, %c0_93] : memref<9x32x64xf32, #tpu.memory_space<vmem>>, vector<1x32x64xf32>
      %102 = vector.shape_cast %101 : vector<1x32x64xf32> to vector<32x64xf32>
      %cst_94 = arith.constant dense<0.000000e+00> : vector<25x64xf32>
      %103 = tpu.matmul %100, %102, %cst_94 {dimension_numbers = #tpu.dot_dimension_numbers<[1], [0], [0], [1], [0, 0, 1, 1], [], []>} : vector<25x32xf32>, vector<32x64xf32>, vector<25x64xf32> -> vector<25x64xf32>
      %104 = arith.addf %95, %103 : vector<25x64xf32>
      %c0_95 = arith.constant 0 : index
      %c0_96 = arith.constant 0 : index
      %105 = vector.load %arg6[%c0_95, %c0_96] : memref<1x64xf32, #tpu.memory_space<vmem>>, vector<1x64xf32>
      %106 = vector.broadcast %105 : vector<1x64xf32> to vector<25x64xf32>
      %107 = arith.addf %104, %106 : vector<25x64xf32>
      %cst_97 = arith.constant 0.000000e+00 : f32
      %108 = vector.broadcast %cst_97 : f32 to vector<25x64xf32>
      %109 = arith.maximumf %107, %108 : vector<25x64xf32>
      %c25_i32_98 = arith.constant 25 : i32
      %110 = arith.muli %22, %c25_i32_98 : i32
      %111 = arith.index_cast %110 : i32 to index
      %c0_99 = arith.constant 0 : index
      %112 = vector.load %arg20[%111, %c0_99] : memref<625x64xf32, #tpu.memory_space<vmem>>, vector<25x64xf32>
      tpu.vector_store %arg20[%111, %c0_99], %109 {strides = array<i32>} : memref<625x64xf32, #tpu.memory_space<vmem>>, vector<25x64xf32>,
    }
    %c25_i32_8 = arith.constant 25 : i32
    %c0_i32_9 = arith.constant 0 : i32
    %c12_i32 = arith.constant 12 : i32
    %5 = arith.addi %c0_i32_9, %c12_i32 : i32
    %c1_i32_10 = arith.constant 1 : i32
    scf.for %arg23 = %c0_i32_9 to %5 step %c1_i32_10  : i32 {
      %c1_i32_29 = arith.constant 1 : i32
      %21 = arith.muli %arg23, %c1_i32_29 : i32
      %c0_i32_30 = arith.constant 0 : i32
      %22 = arith.addi %c0_i32_30, %21 : i32
      %c2_i32 = arith.constant 2 : i32
      %23 = arith.muli %c2_i32, %22 : i32
      %c25_i32_31 = arith.constant 25 : i32
      %24 = arith.muli %23, %c25_i32_31 : i32
      %25 = arith.index_cast %24 : i32 to index
      %c0_32 = arith.constant 0 : index
      %26 = vector.load %arg20[%25, %c0_32] : memref<625x64xf32, #tpu.memory_space<vmem>>, vector<25x64xf32>
      %c2_i32_33 = arith.constant 2 : i32
      %27 = arith.muli %c2_i32_33, %22 : i32
      %c1_i32_34 = arith.constant 1 : i32
      %28 = arith.addi %27, %c1_i32_34 : i32
      %c25_i32_35 = arith.constant 25 : i32
      %29 = arith.muli %28, %c25_i32_35 : i32
      %30 = arith.index_cast %29 : i32 to index
      %c0_36 = arith.constant 0 : index
      %31 = vector.load %arg20[%30, %c0_36] : memref<625x64xf32, #tpu.memory_space<vmem>>, vector<25x64xf32>
      %32 = arith.maximumf %26, %31 : vector<25x64xf32>
      %c0_37 = arith.constant 0 : index
      %c0_38 = arith.constant 0 : index
      %33 = vector.load %arg11[%c0_37, %c0_38] : memref<12x25xf32, #tpu.memory_space<vmem>>, vector<12x25xf32>
      %cst_39 = arith.constant dense<0.000000e+00> : vector<12x64xf32>
      %34 = tpu.matmul %33, %32, %cst_39 {dimension_numbers = #tpu.dot_dimension_numbers<[1], [0], [0], [1], [0, 0, 1, 1], [], []>} : vector<12x25xf32>, vector<25x64xf32>, vector<12x64xf32> -> vector<12x64xf32>
      %c0_40 = arith.constant 0 : index
      %c0_41 = arith.constant 0 : index
      %35 = vector.load %arg12[%c0_40, %c0_41] : memref<12x25xf32, #tpu.memory_space<vmem>>, vector<12x25xf32>
      %cst_42 = arith.constant dense<0.000000e+00> : vector<12x64xf32>
      %36 = tpu.matmul %35, %32, %cst_42 {dimension_numbers = #tpu.dot_dimension_numbers<[1], [0], [0], [1], [0, 0, 1, 1], [], []>} : vector<12x25xf32>, vector<25x64xf32>, vector<12x64xf32> -> vector<12x64xf32>
      %37 = arith.maximumf %34, %36 : vector<12x64xf32>
      %c12_i32_43 = arith.constant 12 : i32
      %38 = arith.muli %22, %c12_i32_43 : i32
      %39 = arith.index_cast %38 : i32 to index
      %c0_44 = arith.constant 0 : index
      %40 = vector.load %arg21[%39, %c0_44] : memref<144x64xf32, #tpu.memory_space<vmem>>, vector<12x64xf32>
      tpu.vector_store %arg21[%39, %c0_44], %37 {strides = array<i32>} : memref<144x64xf32, #tpu.memory_space<vmem>>, vector<12x64xf32>,
    }
    %c12_i32_11 = arith.constant 12 : i32
    %c0_i32_12 = arith.constant 0 : i32
    %c11_i32 = arith.constant 11 : i32
    %6 = arith.addi %c0_i32_12, %c11_i32 : i32
    %c1_i32_13 = arith.constant 1 : i32
    scf.for %arg23 = %c0_i32_12 to %6 step %c1_i32_13  : i32 {
      %c1_i32_29 = arith.constant 1 : i32
      %21 = arith.muli %arg23, %c1_i32_29 : i32
      %c0_i32_30 = arith.constant 0 : i32
      %22 = arith.addi %c0_i32_30, %21 : i32
      %cst_31 = arith.constant 0.000000e+00 : f32
      %23 = vector.broadcast %cst_31 : f32 to vector<11x64xf32>
      %c0_i32_32 = arith.constant 0 : i32
      %24 = arith.addi %22, %c0_i32_32 : i32
      %c12_i32_33 = arith.constant 12 : i32
      %25 = arith.muli %24, %c12_i32_33 : i32
      %c0_i32_34 = arith.constant 0 : i32
      %26 = arith.addi %25, %c0_i32_34 : i32
      %27 = arith.index_cast %26 : i32 to index
      %c0_35 = arith.constant 0 : index
      %28 = vector.load %arg21[%27, %c0_35] : memref<144x64xf32, #tpu.memory_space<vmem>>, vector<11x64xf32>
      %c0_36 = arith.constant 0 : index
      %c0_37 = arith.constant 0 : index
      %c0_38 = arith.constant 0 : index
      %29 = vector.load %arg7[%c0_36, %c0_37, %c0_38] : memref<4x64x64xf32, #tpu.memory_space<vmem>>, vector<1x64x64xf32>
      %30 = vector.shape_cast %29 : vector<1x64x64xf32> to vector<64x64xf32>
      %cst_39 = arith.constant dense<0.000000e+00> : vector<11x64xf32>
      %31 = tpu.matmul %28, %30, %cst_39 {dimension_numbers = #tpu.dot_dimension_numbers<[1], [0], [0], [1], [0, 0, 1, 1], [], []>} : vector<11x64xf32>, vector<64x64xf32>, vector<11x64xf32> -> vector<11x64xf32>
      %32 = arith.addf %23, %31 : vector<11x64xf32>
      %c0_i32_40 = arith.constant 0 : i32
      %33 = arith.addi %22, %c0_i32_40 : i32
      %c12_i32_41 = arith.constant 12 : i32
      %34 = arith.muli %33, %c12_i32_41 : i32
      %c1_i32_42 = arith.constant 1 : i32
      %35 = arith.addi %34, %c1_i32_42 : i32
      %36 = arith.index_cast %35 : i32 to index
      %c0_43 = arith.constant 0 : index
      %37 = vector.load %arg21[%36, %c0_43] : memref<144x64xf32, #tpu.memory_space<vmem>>, vector<11x64xf32>
      %c1 = arith.constant 1 : index
      %c0_44 = arith.constant 0 : index
      %c0_45 = arith.constant 0 : index
      %38 = vector.load %arg7[%c1, %c0_44, %c0_45] : memref<4x64x64xf32, #tpu.memory_space<vmem>>, vector<1x64x64xf32>
      %39 = vector.shape_cast %38 : vector<1x64x64xf32> to vector<64x64xf32>
      %cst_46 = arith.constant dense<0.000000e+00> : vector<11x64xf32>
      %40 = tpu.matmul %37, %39, %cst_46 {dimension_numbers = #tpu.dot_dimension_numbers<[1], [0], [0], [1], [0, 0, 1, 1], [], []>} : vector<11x64xf32>, vector<64x64xf32>, vector<11x64xf32> -> vector<11x64xf32>
      %41 = arith.addf %32, %40 : vector<11x64xf32>
      %c1_i32_47 = arith.constant 1 : i32
      %42 = arith.addi %22, %c1_i32_47 : i32
      %c12_i32_48 = arith.constant 12 : i32
      %43 = arith.muli %42, %c12_i32_48 : i32
      %c0_i32_49 = arith.constant 0 : i32
      %44 = arith.addi %43, %c0_i32_49 : i32
      %45 = arith.index_cast %44 : i32 to index
      %c0_50 = arith.constant 0 : index
      %46 = vector.load %arg21[%45, %c0_50] : memref<144x64xf32, #tpu.memory_space<vmem>>, vector<11x64xf32>
      %c2 = arith.constant 2 : index
      %c0_51 = arith.constant 0 : index
      %c0_52 = arith.constant 0 : index
      %47 = vector.load %arg7[%c2, %c0_51, %c0_52] : memref<4x64x64xf32, #tpu.memory_space<vmem>>, vector<1x64x64xf32>
      %48 = vector.shape_cast %47 : vector<1x64x64xf32> to vector<64x64xf32>
      %cst_53 = arith.constant dense<0.000000e+00> : vector<11x64xf32>
      %49 = tpu.matmul %46, %48, %cst_53 {dimension_numbers = #tpu.dot_dimension_numbers<[1], [0], [0], [1], [0, 0, 1, 1], [], []>} : vector<11x64xf32>, vector<64x64xf32>, vector<11x64xf32> -> vector<11x64xf32>
      %50 = arith.addf %41, %49 : vector<11x64xf32>
      %c1_i32_54 = arith.constant 1 : i32
      %51 = arith.addi %22, %c1_i32_54 : i32
      %c12_i32_55 = arith.constant 12 : i32
      %52 = arith.muli %51, %c12_i32_55 : i32
      %c1_i32_56 = arith.constant 1 : i32
      %53 = arith.addi %52, %c1_i32_56 : i32
      %54 = arith.index_cast %53 : i32 to index
      %c0_57 = arith.constant 0 : index
      %55 = vector.load %arg21[%54, %c0_57] : memref<144x64xf32, #tpu.memory_space<vmem>>, vector<11x64xf32>
      %c3 = arith.constant 3 : index
      %c0_58 = arith.constant 0 : index
      %c0_59 = arith.constant 0 : index
      %56 = vector.load %arg7[%c3, %c0_58, %c0_59] : memref<4x64x64xf32, #tpu.memory_space<vmem>>, vector<1x64x64xf32>
      %57 = vector.shape_cast %56 : vector<1x64x64xf32> to vector<64x64xf32>
      %cst_60 = arith.constant dense<0.000000e+00> : vector<11x64xf32>
      %58 = tpu.matmul %55, %57, %cst_60 {dimension_numbers = #tpu.dot_dimension_numbers<[1], [0], [0], [1], [0, 0, 1, 1], [], []>} : vector<11x64xf32>, vector<64x64xf32>, vector<11x64xf32> -> vector<11x64xf32>
      %59 = arith.addf %50, %58 : vector<11x64xf32>
      %c0_61 = arith.constant 0 : index
      %c0_62 = arith.constant 0 : index
      %60 = vector.load %arg8[%c0_61, %c0_62] : memref<1x64xf32, #tpu.memory_space<vmem>>, vector<1x64xf32>
      %61 = vector.broadcast %60 : vector<1x64xf32> to vector<11x64xf32>
      %62 = arith.addf %59, %61 : vector<11x64xf32>
      %cst_63 = arith.constant 0.000000e+00 : f32
      %63 = vector.broadcast %cst_63 : f32 to vector<11x64xf32>
      %64 = arith.maximumf %62, %63 : vector<11x64xf32>
      %c11_i32_64 = arith.constant 11 : i32
      %65 = arith.muli %22, %c11_i32_64 : i32
      %66 = arith.index_cast %65 : i32 to index
      %c0_65 = arith.constant 0 : index
      %67 = vector.load %arg22[%66, %c0_65] : memref<121x64xf32, #tpu.memory_space<vmem>>, vector<11x64xf32>
      tpu.vector_store %arg22[%66, %c0_65], %64 {strides = array<i32>} : memref<121x64xf32, #tpu.memory_space<vmem>>, vector<11x64xf32>,
    }
    %c11_i32_14 = arith.constant 11 : i32
    %cst = arith.constant 0.000000e+00 : f32
    %7 = vector.broadcast %cst : f32 to vector<1x128xf32>
    %c0_i32_15 = arith.constant 0 : i32
    %c121_i32 = arith.constant 121 : i32
    %8 = arith.addi %c0_i32_15, %c121_i32 : i32
    %c1_i32_16 = arith.constant 1 : i32
    %9 = scf.for %arg23 = %c0_i32_15 to %8 step %c1_i32_16 iter_args(%arg24 = %7) -> (vector<1x128xf32>)  : i32 {
      %21 = arith.index_cast %arg23 : i32 to index
      %c0_29 = arith.constant 0 : index
      %22 = vector.load %arg22[%21, %c0_29] : memref<121x64xf32, #tpu.memory_space<vmem>>, vector<1x64xf32>
      %23 = arith.index_cast %arg23 : i32 to index
      %c0_30 = arith.constant 0 : index
      %c0_31 = arith.constant 0 : index
      %24 = vector.load %arg13[%23, %c0_30, %c0_31] : memref<121x64x128xf32, #tpu.memory_space<vmem>>, vector<1x64x128xf32>
      %25 = vector.shape_cast %24 : vector<1x64x128xf32> to vector<64x128xf32>
      %cst_32 = arith.constant dense<0.000000e+00> : vector<1x128xf32>
      %26 = tpu.matmul %22, %25, %cst_32 {dimension_numbers = #tpu.dot_dimension_numbers<[1], [0], [0], [1], [0, 0, 1, 1], [], []>} : vector<1x64xf32>, vector<64x128xf32>, vector<1x128xf32> -> vector<1x128xf32>
      %27 = arith.addf %arg24, %26 : vector<1x128xf32>
      scf.yield %27 : vector<1x128xf32>
    }
    %c121_i32_17 = arith.constant 121 : i32
    %c0_18 = arith.constant 0 : index
    %c0_19 = arith.constant 0 : index
    %10 = vector.load %arg14[%c0_18, %c0_19] : memref<1x128xf32, #tpu.memory_space<vmem>>, vector<1x128xf32>
    %11 = arith.addf %9, %10 : vector<1x128xf32>
    %cst_20 = arith.constant 0.000000e+00 : f32
    %12 = vector.broadcast %cst_20 : f32 to vector<1x128xf32>
    %13 = arith.maximumf %11, %12 : vector<1x128xf32>
    %c0_21 = arith.constant 0 : index
    %c0_22 = arith.constant 0 : index
    %14 = vector.load %arg15[%c0_21, %c0_22] : memref<128x10xf32, #tpu.memory_space<vmem>>, vector<128x10xf32>
    %cst_23 = arith.constant dense<0.000000e+00> : vector<1x10xf32>
    %15 = tpu.matmul %13, %14, %cst_23 {dimension_numbers = #tpu.dot_dimension_numbers<[1], [0], [0], [1], [0, 0, 1, 1], [], []>} : vector<1x128xf32>, vector<128x10xf32>, vector<1x10xf32> -> vector<1x10xf32>
    %c0_24 = arith.constant 0 : index
    %c0_25 = arith.constant 0 : index
    %16 = vector.load %arg16[%c0_24, %c0_25] : memref<1x10xf32, #tpu.memory_space<vmem>>, vector<1x10xf32>
    %17 = arith.addf %15, %16 : vector<1x10xf32>
    %c0_26 = arith.constant 0 : index
    %c0_27 = arith.constant 0 : index
    %c0_28 = arith.constant 0 : index
    %18 = vector.load %arg17[%c0_26, %c0_27, %c0_28] : memref<1x1x10xf32, #tpu.memory_space<vmem>>, vector<1x1x10xf32>
    %19 = vector.shape_cast %18 : vector<1x1x10xf32> to vector<1x10xf32>
    %20 = vector.shape_cast %17 : vector<1x10xf32> to vector<1x1x10xf32>
    tpu.vector_store %arg17[%c0_26, %c0_27, %c0_28], %20 {strides = array<i32>} : memref<1x1x10xf32, #tpu.memory_space<vmem>>, vector<1x1x10xf32>,
    return
  }
  func.func @transform_0(%arg0: i32) -> (i32, i32, i32) {
    %c0_i32 = arith.constant 0 : i32
    %c0_i32_0 = arith.constant 0 : i32
    %c0_i32_1 = arith.constant 0 : i32
    return %arg0, %c0_i32, %c0_i32_0 : i32, i32, i32
  }
  func.func @transform_1(%arg0: i32) -> (i32, i32) {
    %c0_i32 = arith.constant 0 : i32
    %c0_i32_0 = arith.constant 0 : i32
    %c0_i32_1 = arith.constant 0 : i32
    return %c0_i32, %c0_i32_0 : i32, i32
  }
  func.func @transform_2(%arg0: i32) -> (i32, i32, i32) {
    %c0_i32 = arith.constant 0 : i32
    %c0_i32_0 = arith.constant 0 : i32
    %c0_i32_1 = arith.constant 0 : i32
    %c0_i32_2 = arith.constant 0 : i32
    return %c0_i32, %c0_i32_0, %c0_i32_1 : i32, i32, i32
  }
  func.func @transform_3(%arg0: i32) -> (i32, i32) {
    %c0_i32 = arith.constant 0 : i32
    %c0_i32_0 = arith.constant 0 : i32
    %c0_i32_1 = arith.constant 0 : i32
    return %c0_i32, %c0_i32_0 : i32, i32
  }
  func.func @transform_4(%arg0: i32) -> (i32, i32, i32) {
    %c0_i32 = arith.constant 0 : i32
    %c0_i32_0 = arith.constant 0 : i32
    %c0_i32_1 = arith.constant 0 : i32
    %c0_i32_2 = arith.constant 0 : i32
    return %c0_i32, %c0_i32_0, %c0_i32_1 : i32, i32, i32
  }
  func.func @transform_5(%arg0: i32) -> (i32, i32) {
    %c0_i32 = arith.constant 0 : i32
    %c0_i32_0 = arith.constant 0 : i32
    %c0_i32_1 = arith.constant 0 : i32
    return %c0_i32, %c0_i32_0 : i32, i32
  }
  func.func @transform_6(%arg0: i32) -> (i32, i32, i32) {
    %c0_i32 = arith.constant 0 : i32
    %c0_i32_0 = arith.constant 0 : i32
    %c0_i32_1 = arith.constant 0 : i32
    %c0_i32_2 = arith.constant 0 : i32
    return %c0_i32, %c0_i32_0, %c0_i32_1 : i32, i32, i32
  }
  func.func @transform_7(%arg0: i32) -> (i32, i32) {
    %c0_i32 = arith.constant 0 : i32
    %c0_i32_0 = arith.constant 0 : i32
    %c0_i32_1 = arith.constant 0 : i32
    return %c0_i32, %c0_i32_0 : i32, i32
  }
  func.func @transform_8(%arg0: i32) -> (i32, i32) {
    %c0_i32 = arith.constant 0 : i32
    %c0_i32_0 = arith.constant 0 : i32
    %c0_i32_1 = arith.constant 0 : i32
    return %c0_i32, %c0_i32_0 : i32, i32
  }
  func.func @transform_9(%arg0: i32) -> (i32, i32) {
    %c0_i32 = arith.constant 0 : i32
    %c0_i32_0 = arith.constant 0 : i32
    %c0_i32_1 = arith.constant 0 : i32
    return %c0_i32, %c0_i32_0 : i32, i32
  }
  func.func @transform_10(%arg0: i32) -> (i32, i32) {
    %c0_i32 = arith.constant 0 : i32
    %c0_i32_0 = arith.constant 0 : i32
    %c0_i32_1 = arith.constant 0 : i32
    return %c0_i32, %c0_i32_0 : i32, i32
  }
  func.func @transform_11(%arg0: i32) -> (i32, i32) {
    %c0_i32 = arith.constant 0 : i32
    %c0_i32_0 = arith.constant 0 : i32
    %c0_i32_1 = arith.constant 0 : i32
    return %c0_i32, %c0_i32_0 : i32, i32
  }
  func.func @transform_12(%arg0: i32) -> (i32, i32, i32) {
    %c0_i32 = arith.constant 0 : i32
    %c0_i32_0 = arith.constant 0 : i32
    %c0_i32_1 = arith.constant 0 : i32
    %c0_i32_2 = arith.constant 0 : i32
    return %c0_i32, %c0_i32_0, %c0_i32_1 : i32, i32, i32
  }
  func.func @transform_13(%arg0: i32) -> (i32, i32) {
    %c0_i32 = arith.constant 0 : i32
    %c0_i32_0 = arith.constant 0 : i32
    %c0_i32_1 = arith.constant 0 : i32
    return %c0_i32, %c0_i32_0 : i32, i32
  }
  func.func @transform_14(%arg0: i32) -> (i32, i32) {
    %c0_i32 = arith.constant 0 : i32
    %c0_i32_0 = arith.constant 0 : i32
    %c0_i32_1 = arith.constant 0 : i32
    return %c0_i32, %c0_i32_0 : i32, i32
  }
  func.func @transform_15(%arg0: i32) -> (i32, i32) {
    %c0_i32 = arith.constant 0 : i32
    %c0_i32_0 = arith.constant 0 : i32
    %c0_i32_1 = arith.constant 0 : i32
    return %c0_i32, %c0_i32_0 : i32, i32
  }
  func.func @transform_16(%arg0: i32) -> (i32, i32, i32) {
    %c0_i32 = arith.constant 0 : i32
    %c0_i32_0 = arith.constant 0 : i32
    %c0_i32_1 = arith.constant 0 : i32
    return %arg0, %c0_i32, %c0_i32_0 : i32, i32, i32
  }
}

</mosaic_0001>

<bundles_post_ra>
// kernel: model_forward.1
= control target key start
LH: loop header
LB: loop body
LE: loop exit
PB: predicated region body
PF: predicated region fallthrough
CT: control target
= control target key end

     0   :  { %s6505_s0 = inlined_call_operand.vmem [shape: f32[2,10,10], index: 0, kind: input, shape index: {}]   ;;  %s6506_s1 = inlined_call_operand.vmem [shape: f32[56,10], index: 1, kind: input, shape index: {}]   ;;  %s6507_s2 = inlined_call_operand.vmem [shape: f32[162,10,32], index: 2, kind: input, shape index: {}]   ;;  %s6508_s3 = inlined_call_operand.hbm [shape: f32[1,32], index: 3, kind: input, shape index: {}]   ;;  %s6509_s4 = inlined_call_operand.hbm [shape: f32[9,32,64], index: 4, kind: input, shape index: {}]   ;;  %s6510_s5 = inlined_call_operand.hbm [shape: f32[1,64], index: 5, kind: input, shape index: {}]   ;;  %s6511_s6 = inlined_call_operand.hbm [shape: f32[4,64,64], index: 6, kind: input, shape index: {}]   ;;  %s6512_s7 = inlined_call_operand.hbm [shape: f32[1,64], index: 7, kind: input, shape index: {}]   ;;  %s6513_s8 = inlined_call_operand.hbm [shape: f32[27,54], index: 8, kind: input, shape index: {}]   ;;  %s6514_s9 = inlined_call_operand.hbm [shape: f32[27,54], index: 9, kind: input, shape index: {}]   ;;  %s6515_s10 = inlined_call_operand.hbm [shape: f32[12,25], index: 10, kind: input, shape index: {}]   ;;  %s6516_s11 = inlined_call_operand.hbm [shape: f32[12,25], index: 11, kind: input, shape index: {}]   ;;  %s6517_s12 = inlined_call_operand.hbm [shape: f32[121,64,128], index: 12, kind: input, shape index: {}]   ;;  %s6518_s13 = inlined_call_operand.hbm [shape: f32[1,128], index: 13, kind: input, shape index: {}]   ;;  %s6519_s14 = inlined_call_operand.vmem [shape: f32[128,10], index: 14, kind: input, shape index: {}]   ;;  %s6520_s15 = inlined_call_operand.hbm [shape: f32[1,10], index: 15, kind: input, shape index: {}]   ;;  %s6521_s16 = inlined_call_operand.hbm [shape: f32[2,1,10], index: 16, kind: output, shape index: {}]  }
   0x1   :  { %6536 = sst [smem:[#allocation43_spill]] %s6505_s0 }
   0x2   :  { %6537 = sst [smem:[#allocation44_spill]] %s6506_s1 }
   0x3   :  { %6538 = sst [smem:[#allocation45_spill]] %s6507_s2 }
   0x4   :  { %6539 = sst [smem:[#allocation46_spill]] %s6509_s4 }
   0x5   :  { %6540 = sst [smem:[#allocation47_spill]] %s6519_s14 }
   0x6   :  { %6541 = sst [smem:[#allocation48_spill]] %s6521_s16 }
   0x7   :  { %21 = vsyncpa [#allocation8], 0 }
   0x8   :  { %22 = vsyncpa [#allocation11], 0 }
   0x9   :  { %23 = vsyncpa [#allocation14], 0 }
   0xa   :  { %24 = vsyncpa [#allocation17], 0 }
   0xb   :  { %25 = vsyncpa [#allocation20], 0 }
   0xc   :  { %26 = vsyncpa [#allocation23], 0 }
   0xd   :  { %27 = vsyncpa [#allocation26], 0 }
   0xe   :  { %28 = vsyncpa [#allocation9], 0 }
   0xf   :  { %30 = vsyncpa [#allocation9 + $0x1], 0  ;;  %s5677_s21 = smov 0   ;;  %s5679_s22 = smov 0  }
  0x10   :  { %s5681_s23 = smov 0   ;;  %s5683_s24 = smov 0  }
  0x11 LB: > { %6542 = sst [smem:[#allocation36_spill]] %s5524_s21  ;;  %s5698_s25 = sadd.s32 4294967295, %s5536_s24   ;;  %s5536_s24 = sphi %s5683_s24, %s6583_s24   ;;  %s5532_s23 = sphi %s5681_s23, %s6585_s23   ;;  %s5528_s22 = sphi %s5679_s22, %s6587_s22   ;;  %s5524_s21 = sphi %s5677_s21, %s6586_s21  }
  0x12   : > { %6543 = sst [smem:[#allocation37_spill]] %s5532_s23  ;;  %s3746_s26 = sadd.s32 4294967294, %s5536_s24  }
  0x13   : > { %6544 = sst [smem:[#allocation38_spill]] %s5536_s24  ;;  %s5702_s27 = sadd.s32 1, %s5536_s24  }
  0x14   : > { %6545 = sst [smem:[#allocation39_spill]] %s5702_s27  ;;  %s384_s28 = sadd.s32 1, %s5532_s23 }
  0x15   : > { %s381_s29 = ssub.s32 %s5536_s24, %s5702_s27  ;;  %p394_p0 = scmp.ne.s32.totalorder %s5532_s23, %s5528_s22 }
  0x16   : > { %p382_p1 = scmp.eq.s32.totalorder %s381_s29, 0  ;;  %p395_p2 = scmp.eq.s32.totalorder %s5698_s25, 1 }
  0x17   : > { %p400_p3 = scmp.ne.s32.totalorder %s5528_s22, %s5524_s21  ;;  %p401_p4 = scmp.eq.s32.totalorder %s3746_s26, 1 }
  0x18   : > { %s5713_s30 = scalar_select %p382_p1, %s5532_s23, %s384_s28  }
  0x19   : > { %p5715_p5 = por %p395_p2, %p394_p0  ;;  %p5719_p6 = por %p401_p4, %p400_p3 }
  0x1a   : > { %6546 = sst [smem:[#allocation40_spill]] %s5713_s30  ;;  %p3747_p7 = scmp.ge.s32.totalorder %s5536_s24, 1 }
  0x1b   : > { %s6547_s0 = scalar_select %p5715_p5, 1, 0 }
  0x1c   : > { %s6549_s17 = scalar_select %p5719_p6, 1, 0 }
  0x1d   : > { %6548 = sst [smem:[#allocation41_spill]] %s6547_s0  ;;  %p408_p8 = scmp.lt.s32.totalorder %s5536_s24, 3 }
  0x1e   : > { %6550 = sst [smem:[#allocation42_spill]] %s6549_s17  ;;  %p6529_p9 = scmp.eq.s32.totalorder %s5698_s25, 0 }
  0x1f   : > { %p5726_p10 = pnand %p3747_p7, %p408_p8  ;;  %s5566_s19 = smov [#allocation10]  }
  0x20   : > { %s437_s20 = sshll.u32 %s5566_s19, 4  ;;  %s5567_s28 = smov [#allocation13]   ;;  %s5732_s20 = int_to_ptr.vmem [resolvable:$true] %s437_s20 }
  0x21   : > { %s6551_s18 = scalar_select %p5726_p10, 1, 0 }
  0x22   : > { %p4903_p11 = pneg %p5726_p10  ;;  %s461_s29 = sshll.u32 %s5567_s28, 4  ;;  %s5740_s29 = int_to_ptr.vmem [resolvable:$true] %s461_s29 }
  0x23   : > { %s5568_s30 = smov [#allocation16]   ;;  %s6553_s4 = sld [smem:[#allocation46_spill]] }
  0x24   : > { %p5736_p12 = pnand %p6529_p9, %p4903_p11  ;;  %s5742_s23 = sshll.u32 %s5568_s30, 4  ;;  %s486_s23 = int_to_ptr.vmem [resolvable:$true] %s5742_s23 }
  0x26   : > { %p5752_p0 = pneg %p5736_p12 }
  0x29   : > { %s5082_s19 = scalar_lea.hbm %s6553_s4, 4608 }
  0x2a   : > { %p5083_p13 = scmp.ne.s32.totalorder %s6553_s4, %s5082_s19  ;;  %p5089_p3 = scmp.lt.u32.totalorder %s5082_s19, %s6553_s4 }
  0x2c   : > { %p5085_p1 = pnand %p5752_p0, %p5083_p13 }
  0x2e   : > { %p5086_p2 = pneg %p5085_p1 }
  0x30   : > { %p5091_p4 = pnand %p5089_p3, %p5086_p2 }
  0x32   : > { %5094 = shalt.err (!%p5091_p4)
}
  0x33   : > { %s5095_s21 = scalar_lea.vmem %s5732_s20, 4608  ;;  %p5103_p9 = scmp.lt.s32.totalorder %s5732_s20, %s5732_s20 }
  0x34   : > { %p5096_p7 = scmp.ne.s32.totalorder %s5732_s20, %s5095_s21  ;;  %p5104_p6 = scmp.lt.s32.totalorder %s5095_s21, %s5095_s21 }
  0x36   : > { %p5098_p8 = pnand %p5096_p7, %p5752_p0  ;;  %p5105_p13 = por %p5104_p6, %p5103_p9 }
  0x38   : > { %p5099_p11 = pneg %p5098_p8 }
  0x3a   : > { %p5106_p1 = pnand %p5105_p13, %p5099_p11 }
  0x3c   : > { %5109 = shalt.err (!%p5106_p1)
}
  0x3d   : > { %s5569_s24 = smov 128   ;;  %s5570_s27 = smov 8  }
  0x3e   : > { %4909 = dma.hbm_to_vmem [thread:$0]  (!%p5736_p12), %s6553_s4, 4608, %s5732_s20, [#allocation11], %s5569_s24, %s5569_s24, %s5570_s27  }
  0x3f   : > { %s5110_s21 = scalar_lea.hbm %s6511_s6, 4096 }
  0x40   : > { %p5111_p6 = scmp.ne.s32.totalorder %s6511_s6, %s5110_s21  ;;  %p5117_p3 = scmp.lt.u32.totalorder %s5110_s21, %s6511_s6 }
  0x42   : > { %p5113_p9 = pnand %p5111_p6, %p5752_p0 }
  0x44   : > { %p5114_p2 = pneg %p5113_p9 }
  0x46   : > { %p5119_p4 = pnand %p5117_p3, %p5114_p2 }
  0x48   : > { %5122 = shalt.err (!%p5119_p4)
}
  0x49   : > { %s5123_s20 = scalar_lea.vmem %s5740_s29, 4096  ;;  %p5131_p13 = scmp.lt.s32.totalorder %s5740_s29, %s5740_s29 }
  0x4a   : > { %p5124_p7 = scmp.ne.s32.totalorder %s5740_s29, %s5123_s20  ;;  %p5132_p1 = scmp.lt.s32.totalorder %s5123_s20, %s5123_s20 }
  0x4c   : > { %p5126_p8 = pnand %p5124_p7, %p5752_p0  ;;  %p5133_p6 = por %p5132_p1, %p5131_p13 }
  0x4e   : > { %p5127_p11 = pneg %p5126_p8 }
  0x50   : > { %p5134_p9 = pnand %p5133_p6, %p5127_p11 }
  0x52   : > { %5137 = shalt.err (!%p5134_p9)
}
  0x53   : > { %4915 = dma.hbm_to_vmem [thread:$0]  (!%p5736_p12), %s6511_s6, 4096, %s5740_s29, [#allocation14], %s5569_s24, %s5569_s24, %s5570_s27  }
  0x54   : > { %s5138_s17 = scalar_lea.hbm %s6513_s8, 512 }
  0x55   : > { %p5139_p2 = scmp.ne.s32.totalorder %s6513_s8, %s5138_s17  ;;  %p5145_p7 = scmp.lt.u32.totalorder %s5138_s17, %s6513_s8 }
  0x57   : > { %p5141_p3 = pnand %p5139_p2, %p5752_p0 }
  0x59   : > { %p5142_p4 = pneg %p5141_p3 }
  0x5b   : > { %p5147_p8 = pnand %p5145_p7, %p5142_p4 }
  0x5d   : > { %5150 = shalt.err (!%p5147_p8)
}
  0x5e   : > { %s5151_s20 = scalar_lea.vmem %s486_s23, 512  ;;  %p5159_p6 = scmp.lt.s32.totalorder %s486_s23, %s486_s23 }
  0x5f   : > { %p5152_p11 = scmp.ne.s32.totalorder %s486_s23, %s5151_s20  ;;  %p5160_p9 = scmp.lt.s32.totalorder %s5151_s20, %s5151_s20 }
  0x61   : > { %p5154_p13 = pnand %p5152_p11, %p5752_p0  ;;  %p5161_p5 = por %p5160_p9, %p5159_p6 }
  0x63   : > { %p5155_p1 = pneg %p5154_p13 }
  0x65   : > { %p5162_p10 = pnand %p5161_p5, %p5155_p1 }
  0x67   : > { %5165 = shalt.err (!%p5162_p10)
}
  0x68   : > { %4921 = dma.hbm_to_vmem [thread:$0]  (!%p5736_p12), %s6513_s8, 512, %s486_s23, [#allocation17], %s5569_s24, %s5569_s24, %s5570_s27  }
  0x69   : > { %s5571_s2 = smov [#allocation19]   ;;  %s5572_s0 = smov [#allocation22]  }
  0x6a   : > { %s511_s14 = sshll.u32 %s5571_s2, 4  ;;  %s537_s17 = sshll.u32 %s5572_s0, 4  ;;  %s512_s14 = int_to_ptr.vmem [resolvable:$true] %s511_s14  ;;  %s538_s17 = int_to_ptr.vmem [resolvable:$true] %s537_s17 }
  0x6b   : > { %s5166_s30 = scalar_lea.hbm %s6515_s10, 256 }
  0x6c   : > { %p5167_p5 = scmp.ne.s32.totalorder %s6515_s10, %s5166_s30  ;;  %p5173_p3 = scmp.lt.u32.totalorder %s5166_s30, %s6515_s10 }
  0x6e   : > { %p5169_p10 = pnand %p5167_p5, %p5752_p0 }
  0x70   : > { %p5170_p2 = pneg %p5169_p10 }
  0x72   : > { %p5175_p4 = pnand %p5173_p3, %p5170_p2 }
  0x74   : > { %5178 = shalt.err (!%p5175_p4)
}
  0x75   : > { %s5179_s23 = scalar_lea.vmem %s512_s14, 256  ;;  %p5187_p13 = scmp.lt.s32.totalorder %s512_s14, %s512_s14 }
  0x76   : > { %p5180_p7 = scmp.ne.s32.totalorder %s512_s14, %s5179_s23  ;;  %p5188_p1 = scmp.lt.s32.totalorder %s5179_s23, %s5179_s23 }
  0x78   : > { %p5182_p8 = pnand %p5180_p7, %p5752_p0  ;;  %p5189_p6 = por %p5188_p1, %p5187_p13 }
  0x7a   : > { %p5183_p11 = pneg %p5182_p8 }
  0x7c   : > { %p5190_p9 = pnand %p5189_p6, %p5183_p11 }
  0x7e   : > { %5193 = shalt.err (!%p5190_p9)
}
  0x7f   : > { %4927 = dma.hbm_to_vmem [thread:$0]  (!%p5736_p12), %s6515_s10, 256, %s512_s14, [#allocation20], %s5569_s24, %s5569_s24, %s5570_s27  }
  0x80   : > { %s5194_s19 = scalar_lea.hbm %s6517_s12, 123904 }
  0x81   : > { %p5195_p5 = scmp.ne.s32.totalorder %s6517_s12, %s5194_s19  ;;  %p5201_p3 = scmp.lt.u32.totalorder %s5194_s19, %s6517_s12 }
  0x83   : > { %p5197_p10 = pnand %p5195_p5, %p5752_p0 }
  0x85   : > { %p5198_p2 = pneg %p5197_p10 }
  0x87   : > { %p5203_p4 = pnand %p5201_p3, %p5198_p2 }
  0x89   : > { %5206 = shalt.err (!%p5203_p4)
}
  0x8a   : > { %s5207_s29 = scalar_lea.vmem %s538_s17, 123904  ;;  %p5215_p13 = scmp.lt.s32.totalorder %s538_s17, %s538_s17 }
  0x8b   : > { %p5208_p7 = scmp.ne.s32.totalorder %s538_s17, %s5207_s29  ;;  %p5216_p1 = scmp.lt.s32.totalorder %s5207_s29, %s5207_s29 }
  0x8d   : > { %p5210_p8 = pnand %p5208_p7, %p5752_p0  ;;  %p5217_p6 = por %p5216_p1, %p5215_p13 }
  0x8f   : > { %p5211_p11 = pneg %p5210_p8 }
  0x91   : > { %p5218_p9 = pnand %p5217_p6, %p5211_p11 }
  0x93   : > { %5221 = shalt.err (!%p5218_p9)
}
  0x94   : > { %4933 = dma.hbm_to_vmem [thread:$0]  (!%p5736_p12), %s6517_s12, 123904, %s538_s17, [#allocation23], %s5569_s24, %s5569_s24, %s5570_s27  }
  0x95   : > { %s5573_s4 = smov [#allocation7]   ;;  %s5574_s2 = smov [#allocation12]  }
  0x96   : > { %s427_s1 = sshll.u32 %s5573_s4, 4  ;;  %s451_s0 = sshll.u32 %s5574_s2, 4  ;;  %s428_s1 = int_to_ptr.vmem [resolvable:$true] %s427_s1  ;;  %s452_s0 = int_to_ptr.vmem [resolvable:$true] %s451_s0 }
  0x97   : > { %s5222_s30 = scalar_lea.hbm %s6508_s3, 16 }
  0x98   : > { %p5223_p5 = scmp.ne.s32.totalorder %s6508_s3, %s5222_s30  ;;  %p5229_p3 = scmp.lt.u32.totalorder %s5222_s30, %s6508_s3 }
  0x9a   : > { %p5225_p10 = pnand %p5223_p5, %p5752_p0 }
  0x9c   : > { %p5226_p2 = pneg %p5225_p10 }
  0x9e   : > { %p5231_p4 = pnand %p5229_p3, %p5226_p2 }
  0xa0   : > { %5234 = shalt.err (!%p5231_p4)
}
  0xa1   : > { %s5235_s17 = scalar_lea.vmem %s428_s1, 16  ;;  %s5242_s23 = scalar_lea.vmem %s428_s1, 32 }
  0xa2   : > { %p5236_p7 = scmp.ne.s32.totalorder %s428_s1, %s5235_s17  ;;  %p5243_p13 = scmp.lt.s32.totalorder %s428_s1, %s428_s1 }
  0xa3   : > { %p5244_p1 = scmp.lt.s32.totalorder %s5242_s23, %s5235_s17 }
  0xa4   : > { %p5238_p8 = pnand %p5236_p7, %p5752_p0 }
  0xa5   : > { %p5245_p6 = por %p5244_p1, %p5243_p13 }
  0xa6   : > { %p5239_p11 = pneg %p5238_p8 }
  0xa8   : > { %p5246_p9 = pnand %p5245_p6, %p5239_p11 }
  0xaa   : > { %5249 = shalt.err (!%p5246_p9)
}
  0xab   : > { %4906 = dma.hbm_to_vmem [thread:$0]  (!%p5736_p12), %s6508_s3, 16, %s428_s1, [#allocation8]  }
  0xac   : > { %s5250_s30 = scalar_lea.hbm %s6510_s5, 16 }
  0xad   : > { %p5251_p5 = scmp.ne.s32.totalorder %s6510_s5, %s5250_s30  ;;  %p5257_p3 = scmp.lt.u32.totalorder %s5250_s30, %s6510_s5 }
  0xaf   : > { %p5253_p10 = pnand %p5251_p5, %p5752_p0 }
  0xb1   : > { %p5254_p2 = pneg %p5253_p10 }
  0xb3   : > { %p5259_p4 = pnand %p5257_p3, %p5254_p2 }
  0xb5   : > { %5262 = shalt.err (!%p5259_p4)
}
  0xb6   : > { %s5263_s17 = scalar_lea.vmem %s452_s0, 16  ;;  %s5270_s1 = scalar_lea.vmem %s452_s0, 32 }
  0xb7   : > { %p5264_p7 = scmp.ne.s32.totalorder %s452_s0, %s5263_s17  ;;  %p5271_p13 = scmp.lt.s32.totalorder %s452_s0, %s452_s0 }
  0xb8   : > { %p5272_p1 = scmp.lt.s32.totalorder %s5270_s1, %s5263_s17 }
  0xb9   : > { %p5266_p8 = pnand %p5264_p7, %p5752_p0 }
  0xba   : > { %p5273_p6 = por %p5272_p1, %p5271_p13 }
  0xbb   : > { %p5267_p11 = pneg %p5266_p8 }
  0xbd   : > { %p5274_p9 = pnand %p5273_p6, %p5267_p11 }
  0xbf   : > { %5277 = shalt.err (!%p5274_p9)
}
  0xc0   : > { %4912 = dma.hbm_to_vmem [thread:$0]  (!%p5736_p12), %s6510_s5, 16, %s452_s0, [#allocation11]  }
  0xc1   : > { %s5575_s2 = smov [#allocation15]   ;;  %s5576_s28 = smov [#allocation18]  }
  0xc2   : > { %s475_s19 = sshll.u32 %s5575_s2, 4  ;;  %s498_s30 = sshll.u32 %s5576_s28, 4  ;;  %s476_s19 = int_to_ptr.vmem [resolvable:$true] %s475_s19  ;;  %s499_s30 = int_to_ptr.vmem [resolvable:$true] %s498_s30 }
  0xc3   : > { %s5278_s29 = scalar_lea.hbm %s6512_s7, 16 }
  0xc4   : > { %p5279_p5 = scmp.ne.s32.totalorder %s6512_s7, %s5278_s29  ;;  %p5285_p3 = scmp.lt.u32.totalorder %s5278_s29, %s6512_s7 }
  0xc6   : > { %p5281_p10 = pnand %p5279_p5, %p5752_p0 }
  0xc8   : > { %p5282_p2 = pneg %p5281_p10 }
  0xca   : > { %p5287_p4 = pnand %p5285_p3, %p5282_p2 }
  0xcc   : > { %5290 = shalt.err (!%p5287_p4)
}
  0xcd   : > { %s5291_s0 = scalar_lea.vmem %s476_s19, 16  ;;  %s5298_s4 = scalar_lea.vmem %s476_s19, 32 }
  0xce   : > { %p5292_p7 = scmp.ne.s32.totalorder %s476_s19, %s5291_s0  ;;  %p5299_p13 = scmp.lt.s32.totalorder %s476_s19, %s476_s19 }
  0xcf   : > { %p5300_p1 = scmp.lt.s32.totalorder %s5298_s4, %s5291_s0 }
  0xd0   : > { %p5294_p8 = pnand %p5292_p7, %p5752_p0 }
  0xd1   : > { %p5301_p6 = por %p5300_p1, %p5299_p13 }
  0xd2   : > { %p5295_p11 = pneg %p5294_p8 }
  0xd4   : > { %p5302_p9 = pnand %p5301_p6, %p5295_p11 }
  0xd6   : > { %5305 = shalt.err (!%p5302_p9)
}
  0xd7   : > { %4918 = dma.hbm_to_vmem [thread:$0]  (!%p5736_p12), %s6512_s7, 16, %s476_s19, [#allocation14]  }
  0xd8   : > { %s5306_s29 = scalar_lea.hbm %s6514_s9, 512 }
  0xd9   : > { %p5307_p5 = scmp.ne.s32.totalorder %s6514_s9, %s5306_s29  ;;  %p5313_p3 = scmp.lt.u32.totalorder %s5306_s29, %s6514_s9 }
  0xdb   : > { %p5309_p10 = pnand %p5307_p5, %p5752_p0 }
  0xdd   : > { %p5310_p2 = pneg %p5309_p10 }
  0xdf   : > { %p5315_p4 = pnand %p5313_p3, %p5310_p2 }
  0xe1   : > { %5318 = shalt.err (!%p5315_p4)
}
  0xe2   : > { %s5319_s0 = scalar_lea.vmem %s499_s30, 512  ;;  %p5327_p13 = scmp.lt.s32.totalorder %s499_s30, %s499_s30 }
  0xe3   : > { %p5320_p7 = scmp.ne.s32.totalorder %s499_s30, %s5319_s0  ;;  %p5328_p1 = scmp.lt.s32.totalorder %s5319_s0, %s5319_s0 }
  0xe5   : > { %p5322_p8 = pnand %p5320_p7, %p5752_p0  ;;  %p5329_p6 = por %p5328_p1, %p5327_p13 }
  0xe7   : > { %p5323_p11 = pneg %p5322_p8 }
  0xe9   : > { %p5330_p9 = pnand %p5329_p6, %p5323_p11 }
  0xeb   : > { %5333 = shalt.err (!%p5330_p9)
}
  0xec   : > { %4924 = dma.hbm_to_vmem [thread:$0]  (!%p5736_p12), %s6514_s9, 512, %s499_s30, [#allocation17], %s5569_s24, %s5569_s24, %s5570_s27  }
  0xed   : > { %s5577_s2 = smov [#allocation21]   ;;  %s5578_s21 = smov [#allocation24]  }
  0xee   : > { %s524_s28 = sshll.u32 %s5577_s2, 4  ;;  %s551_s20 = sshll.u32 %s5578_s21, 4  ;;  %s525_s28 = int_to_ptr.vmem [resolvable:$true] %s524_s28  ;;  %s552_s20 = int_to_ptr.vmem [resolvable:$true] %s551_s20 }
  0xef   : > { %s5334_s17 = scalar_lea.hbm %s6516_s11, 256 }
  0xf0   : > { %p5335_p5 = scmp.ne.s32.totalorder %s6516_s11, %s5334_s17  ;;  %p5341_p3 = scmp.lt.u32.totalorder %s5334_s17, %s6516_s11 }
  0xf2   : > { %p5337_p10 = pnand %p5335_p5, %p5752_p0 }
  0xf4   : > { %p5338_p2 = pneg %p5337_p10 }
  0xf6   : > { %p5343_p4 = pnand %p5341_p3, %p5338_p2 }
  0xf8   : > { %5346 = shalt.err (!%p5343_p4)
}
  0xf9   : > { %s5347_s30 = scalar_lea.vmem %s525_s28, 256  ;;  %p5355_p13 = scmp.lt.s32.totalorder %s525_s28, %s525_s28 }
  0xfa   : > { %p5348_p7 = scmp.ne.s32.totalorder %s525_s28, %s5347_s30  ;;  %p5356_p1 = scmp.lt.s32.totalorder %s5347_s30, %s5347_s30 }
  0xfc   : > { %p5350_p8 = pnand %p5348_p7, %p5752_p0  ;;  %p5357_p6 = por %p5356_p1, %p5355_p13 }
  0xfe   : > { %p5351_p11 = pneg %p5350_p8 }
 0x100   : > { %p5358_p9 = pnand %p5357_p6, %p5351_p11 }
 0x102   : > { %5361 = shalt.err (!%p5358_p9)
}
 0x103   : > { %4930 = dma.hbm_to_vmem [thread:$0]  (!%p5736_p12), %s6516_s11, 256, %s525_s28, [#allocation20], %s5569_s24, %s5569_s24, %s5570_s27  }
 0x104   : > { %s5362_s14 = scalar_lea.hbm %s6518_s13, 16 }
 0x105   : > { %p5363_p5 = scmp.ne.s32.totalorder %s6518_s13, %s5362_s14  ;;  %p5369_p3 = scmp.lt.u32.totalorder %s5362_s14, %s6518_s13 }
 0x107   : > { %p5365_p10 = pnand %p5363_p5, %p5752_p0 }
 0x109   : > { %p5366_p2 = pneg %p5365_p10 }
 0x10b   : > { %p5371_p4 = pnand %p5369_p3, %p5366_p2 }
 0x10d   : > { %5374 = shalt.err (!%p5371_p4)
}
 0x10e   : > { %s5375_s19 = scalar_lea.vmem %s552_s20, 16  ;;  %s5382_s24 = scalar_lea.vmem %s552_s20, 32 }
 0x10f   : > { %p5376_p7 = scmp.ne.s32.totalorder %s552_s20, %s5375_s19  ;;  %p5383_p13 = scmp.lt.s32.totalorder %s552_s20, %s552_s20 }
 0x110   : > { %p5384_p1 = scmp.lt.s32.totalorder %s5382_s24, %s5375_s19 }
 0x111   : > { %p5378_p8 = pnand %p5376_p7, %p5752_p0 }
 0x112   : > { %p5385_p6 = por %p5384_p1, %p5383_p13 }
 0x113   : > { %p5379_p11 = pneg %p5378_p8 }
 0x115   : > { %p5386_p9 = pnand %p5385_p6, %p5379_p11 }
 0x117   : > { %5389 = shalt.err (!%p5386_p9)
}
 0x118   : > { %4936 = dma.hbm_to_vmem [thread:$0]  (!%p5736_p12), %s6518_s13, 16, %s552_s20, [#allocation23]  }
 0x119   : > { %s5579_s30 = smov [#allocation25]   ;;  %s5390_s29 = scalar_lea.hbm %s6520_s15, 16 }
 0x11a   : > { %s565_s4 = sshll.u32 %s5579_s30, 4  ;;  %p5391_p5 = scmp.ne.s32.totalorder %s6520_s15, %s5390_s29  ;;  %s566_s4 = int_to_ptr.vmem [resolvable:$true] %s565_s4 }
 0x11b   : > { %p5397_p3 = scmp.lt.u32.totalorder %s5390_s29, %s6520_s15 }
 0x11c   : > { %p5393_p10 = pnand %p5391_p5, %p5752_p0 }
 0x11e   : > { %p5394_p2 = pneg %p5393_p10 }
 0x120   : > { %p5399_p4 = pnand %p5397_p3, %p5394_p2 }
 0x122   : > { %5402 = shalt.err (!%p5399_p4)
}
 0x123   : > { %s5403_s20 = scalar_lea.vmem %s566_s4, 16  ;;  %s5410_s0 = scalar_lea.vmem %s566_s4, 32 }
 0x124   : > { %p5404_p7 = scmp.ne.s32.totalorder %s566_s4, %s5403_s20  ;;  %p5411_p13 = scmp.lt.s32.totalorder %s566_s4, %s566_s4 }
 0x125   : > { %p5412_p1 = scmp.lt.s32.totalorder %s5410_s0, %s5403_s20 }
 0x126   : > { %p5406_p8 = pnand %p5404_p7, %p5752_p0 }
 0x127   : > { %p5413_p6 = por %p5412_p1, %p5411_p13 }
 0x128   : > { %p5407_p11 = pneg %p5406_p8 }
 0x12a   : > { %p5414_p9 = pnand %p5413_p6, %p5407_p11 }
 0x12c   : > { %5417 = shalt.err (!%p5414_p9)
}
 0x12d   : > { %4939 = dma.hbm_to_vmem [thread:$0]  (!%p5736_p12), %s6520_s15, 16, %s566_s4, [#allocation26]  }
 0x12e   : > { %p6555_p5 = scmp.ne.s32.totalorder %s6551_s18, 0 }
 0x12f   : > { %p6556_p10 = scmp.eq.s32.totalorder (!%p6555_p5), %s5698_s25, 0 }
 0x130   : > { %586 = sbr.rel (%p6555_p5) target bundleno = 2541 (0x9ed), region = 84 }
 0x137   : > { %5491 = dma.done.wait (%p6556_p10), [#allocation8], 16   ;;  %p6557_p0 = pmov %p6556_p10 }
 0x139   : > { %5493 = vsyncadd (%p6557_p0), [#allocation8], 4294967280  ;;  %p6558_p2 = pmov %p6557_p0 }
 0x13a   : > { %p6559_p3 = pmov %p6557_p0 }
 0x13b   : > { %5495 = dma.done.wait (%p6558_p2), [#allocation11], 4624  }
 0x13c   : > { %5497 = vsyncadd (%p6559_p3), [#allocation11], 4294962672  ;;  %p6560_p4 = pmov %p6557_p0 }
 0x13d   : > { %p6561_p12 = pmov %p6557_p0 }
 0x13e   : > { %5499 = dma.done.wait (%p6560_p4), [#allocation14], 4112  }
 0x13f   : > { %5501 = vsyncadd (%p6561_p12), [#allocation14], 4294963184  ;;  %p6562_p7 = pmov %p6557_p0 }
 0x140   : > { %p6563_p8 = pmov %p6557_p0 }
 0x141   : > { %5503 = dma.done.wait (%p6562_p7), [#allocation17], 1024  }
 0x142   : > { %5505 = vsyncadd (%p6563_p8), [#allocation17], 4294966272  ;;  %p6564_p11 = pmov %p6557_p0 }
 0x143   : > { %p6565_p13 = pmov %p6557_p0 }
 0x144   : > { %5507 = dma.done.wait (%p6564_p11), [#allocation20], 512  }
 0x145   : > { %5509 = vsyncadd (%p6565_p13), [#allocation20], 4294966784  ;;  %p6566_p1 = pmov %p6557_p0 }
 0x146   : > { %p6567_p6 = pmov %p6557_p0 }
 0x147   : > { %5511 = dma.done.wait (%p6566_p1), [#allocation23], 123920  }
 0x148   : > { %5513 = vsyncadd (%p6567_p6), [#allocation23], 4294843376  ;;  %p6568_p9 = pmov %p6557_p0 }
 0x149   : > { %p6569_p5 = pmov %p6557_p0 }
 0x14a   : > { %5515 = dma.done.wait (%p6568_p9), [#allocation26], 16  }
 0x14b   : > { %5517 = vsyncadd (%p6569_p5), [#allocation26], 4294967280  ;;  %p679_p10 = scmp.lt.s32.totalorder %s5698_s25, 1  ;;  %s677_s16 = sand.u32 1, %s5528_s22  }
 0x14c   : > { %s6570_s30 = sld [smem:[#allocation43_spill]]  ;;  %s6040_s2 = scalar_lea.vmem [#allocation27], %s677_s16 }
 0x14d   : > { %s680_s18 = scalar_select %p679_p10, %s5698_s25, 1 }
 0x14e   : > { %s6042_s21 = smov 0  }
 0x14f   : > { %s3937_s26 = sshll.u32 %s680_s18, 4 }
 0x152   : > { %s683_s4 = scalar_lea.vmem %s6570_s30, %s3937_s26 }
 0x153   : > { %v6034_v0 = vld [vmem:[%s683_s4] sm:$0xff]  ;;  %v6036_v1 = vld [vmem:[%s683_s4 + $0x8] sm:$0x3] }
 0x154 LB: >> { %vm697_vm0 = vcmask 80896   ;;  %vm704_vm1 = vcmask 1041408   ;;  %s3776_s29 = smul.u32 48, %s5540_s21  ;;  %s6571_s1 = sld [smem:[#allocation45_spill]]  ;;  %vm5580_vm2 = vmmov 1   ;;  %v5581_v9 = vmov 0.0|0.0   ;;  %s5540_s21 = sphi %s6042_s21, %s691_s21  }
 0x155   : >> { %4160 = vmatprep.mubr.msk.f32.mxu1 %vm697_vm0, %v6034_v0  ;;  %4153 = vmatprep.mubr.msk.f32.mxu0 %vm697_vm0, %v6034_v0  ;;  %vm6055_vm3 = vmpackc.low %vm704_vm1, %vm5580_vm2  ;;  %vm5582_vm4 = vmmov 0   ;;  %v5583_v10 = vmov 0.0   ;;  %s6574_s19 = sld [smem:[#allocation44_spill]]  ;;  %s1370_s20 = smul.u32 54, %s5540_s21  ;;  %vm1372_vm5 = vcmask 261120   ;;  %vm1379_vm6 = vcmask 259072  }
 0x156   : >> { %s691_s21 = sadd.s32 1, %s5540_s21  }
 0x157   : >> { %s6222_s0 = scalar_lea.vmem [#allocation2], %s1370_s20  ;;  %p688_p0 = scmp.ge.s32.totalorder %s691_s21, 54  }
 0x158   : > { %s6244_s24 = smov (%p688_p0), 0  }
 0x15a   : >> { %s694_s23 = scalar_lea.vmem %s6571_s1, %s3776_s29 }
 0x15b   : >> { %v3781_v3 = vld [vmem:[%s694_s23 + $0x10] sm:$0xff]  ;;  %v3782_v4 = vld [vmem:[%s694_s23 + $0x18] sm:$0x3]  ;;  %v695_v5 = vld [vmem:[%s694_s23] sm:$0xff] }
 0x15c   : >> { %v4569_v6 = vpack.c.bf16 %v3782_v4, %v3781_v3  ;;  %v696_v7 = vld [vmem:[%s694_s23 + $0x8] sm:$0x3]  ;;  %v3803_v16 = vld [vmem:[%s694_s23 + $0x20] sm:$0xff]  ;;  %v786_v21 = vld [vmem:[%s6574_s19 + $0x18] sm:$0xff] }
 0x15d   : >> { %v4563_v8 = vpack.c.bf16 %v696_v7, %v695_v5  ;;  %v3804_v17 = vld [vmem:[%s694_s23 + $0x28] sm:$0x3]  ;;  %v787_v23 = vld [vmem:[%s6574_s19 + $0x20] sm:$0xff]  ;;  %v875_v24 = vld [vmem:[%s6574_s19 + $0x11] sm:$0xff] }
 0x15e   : >> { %4571 = vmatprep.subr.msk.bf16.mxu1 %vm6055_vm3, %v4569_v6  ;;  %v873_v19 = vld [vmem:[%s6574_s19 + $0x1] sm:$0xff]  ;;  %v4583_v20 = vpack.c.bf16 %v3804_v17, %v3803_v16  ;;  %v874_v22 = vld [vmem:[%s6574_s19 + $0x9] sm:$0xff]  ;;  %v876_v26 = vld [vmem:[%s6574_s19 + $0x19] sm:$0xff] }
 0x15f   : >> { %4574 = vmatpush3.bf16.msk.msra.mxu1 %vm6055_vm3, %v4569_v6  ;;  %4565 = vmatprep.subr.msk.bf16.mxu0 %vm6055_vm3, %v4563_v8  ;;  %v788_v25 = vld [vmem:[%s6574_s19 + $0x28] sm:$0xff]  ;;  %v789_v27 = vld [vmem:[%s6574_s19 + $0x30] sm:$0x3f]  ;;  %v783_v31 = vld [vmem:[%s6574_s19] sm:$0xff] }
 0x160   : >> { %4568 = vmatpush3.bf16.msk.msra.mxu0 %vm6055_vm3, %v4563_v8  ;;  %4809 = vmatprep.subr.bf16.mxu1 %v5581_v9  ;;  %v877_v28 = vld [vmem:[%s6574_s19 + $0x21] sm:$0xff]  ;;  %v878_v29 = vld [vmem:[%s6574_s19 + $0x29] sm:$0xff]  ;;  %v879_v30 = vld [vmem:[%s6574_s19 + $0x31] sm:$0x3f] }
 0x161   : >> { %4575 = vmatprep.subr.bf16.mxu0 %v5581_v9  ;;  %v784_v32 = vld [vmem:[%s6574_s19 + $0x8] sm:$0xff]  ;;  %v785_v33 = vld [vmem:[%s6574_s19 + $0x10] sm:$0xff] }
 0x162   : >> { %4161 = vmatmul.mubr.msk.f32.vlgmr.msra.gmra.mrb[0].mxu1 %vm697_vm0, %v6036_v1  ;;  %v1213_v2 = vld [vmem:[%s6574_s19 + $0x12] sm:$0xff]  ;;  %v1216_v16 = vld [vmem:[%s6574_s19 + $0x2a] sm:$0xff] }
 0x163   : >> { %4154 = vmatmul.mubr.msk.f32.vlgmr.msra.gmra.mrb[0].mxu0 %vm697_vm0, %v6036_v1  ;;  %4201 = vmatprep.mubr.msk.f32.mxu1 %vm5582_vm4, %v5583_v10  ;;  %v1217_v17 = vld [vmem:[%s6574_s19 + $0x32] sm:$0x3f] }
 0x164   : >> { %4167 = vmatprep.mubr.msk.f32.mxu0 %vm5582_vm4, %v5583_v10 }
 0x235   : >> { %v4162_v11 = vpop.f32.mrb[0].mxu1 }
 0x236   : >> { %v864_v12 = vpop.f32.mrb[1].mxu1  ;;  %v4155_v13 = vpop.f32.mrb[0].mxu0 }
 0x237   : >> { %v4576_v14 = vpack.c.bf16 %v4162_v11, %v864_v12  ;;  %v774_v15 = vpop.f32.mrb[1].mxu0  ;;  %v1211_v12 = vld [vmem:[%s6574_s19 + $0x2] sm:$0xff] }
 0x238   : >> { %v4580_v18 = vpack.c.bf16 %v4155_v13, %v774_v15  ;;  %v1212_v13 = vld [vmem:[%s6574_s19 + $0xa] sm:$0xff]  ;;  %v1215_v15 = vld [vmem:[%s6574_s19 + $0x22] sm:$0xff] }
 0x239   : >> { %4578 = vmatpush3.bf16.msk.msra.mxu0 %vm6055_vm3, %v4576_v14  ;;  %v1214_v14 = vld [vmem:[%s6574_s19 + $0x1a] sm:$0xff] }
 0x23a   : >> { %4810 = vmatpush3.bf16.msk.msra.mxu1 %vm6055_vm3, %v4580_v18  ;;  %4579 = vmatprep.subr.bf16.mxu0 %v5581_v9 }
 0x23b   : >> { %4589 = vmatprep.subr.bf16.mxu1 %v5581_v9 }
 0x23c   : >> { %4168 = vmatmul.mubr.msk.f32.vlgmr.msra.gmra.mrb[2].mxu0 %vm697_vm0, %v873_v19  ;;  %v3816_v19 = vld [vmem:[#allocation7] ss:$0 sm:$0xff] }
 0x23d   : >> { %4170 = vmatprep.mubr.msk.f32.mxu0 %vm5582_vm4, %v5583_v10  ;;  %4582 = vmatpush3.bf16.msk.msra.mxu0 %vm6055_vm3, %v4580_v18 }
 0x23e   : >> { %4202 = vmatmul.mubr.msk.f32.vlgmr.msra.gmra.mrb[2].mxu1 %vm697_vm0, %v786_v21  ;;  %4585 = vmatprep.subr.msk.bf16.mxu0 %vm6055_vm3, %v4583_v20 }
 0x23f   : >> { %4204 = vmatprep.mubr.msk.f32.mxu1 %vm5582_vm4, %v5583_v10 }
 0x240   : >> { %4171 = vmatmul.mubr.msk.f32.gmra.mrb[4].mxu0 %vm697_vm0, %v874_v22 }
 0x241   : >> { %4173 = vmatprep.mubr.msk.f32.mxu0 %vm5582_vm4, %v5583_v10 }
 0x242   : >> { %4205 = vmatmul.mubr.msk.f32.gmra.mrb[4].mxu1 %vm697_vm0, %v787_v23 }
 0x243   : >> { %4207 = vmatprep.mubr.msk.f32.mxu1 %vm5582_vm4, %v5583_v10 }
 0x244   : >> { %4174 = vmatmul.mubr.msk.f32.gmra.mrb[6].mxu0 %vm697_vm0, %v875_v24 }
 0x245   : >> { %4176 = vmatprep.mubr.msk.f32.mxu0 %vm5582_vm4, %v5583_v10 }
 0x246   : >> { %4208 = vmatmul.mubr.msk.f32.gmra.mrb[6].mxu1 %vm697_vm0, %v788_v25 }
 0x247   : >> { %4210 = vmatprep.mubr.msk.f32.mxu1 %vm5582_vm4, %v5583_v10 }
 0x248   : >> { %4177 = vmatmul.mubr.msk.f32.gmra.mrb[8].mxu0 %vm697_vm0, %v876_v26 }
 0x249   : >> { %4179 = vmatprep.mubr.msk.f32.mxu0 %vm5582_vm4, %v5583_v10 }
 0x24a   : >> { %4211 = vmatmul.mubr.msk.f32.gmra.mrb[8].mxu1 %vm697_vm0, %v789_v27 }
 0x24b   : >> { %4224 = vmatprep.mubr.msk.f32.mxu1 %vm5582_vm4, %v5583_v10 }
 0x24c   : >> { %4180 = vmatmul.mubr.msk.f32.gmra.mrb[10].mxu0 %vm697_vm0, %v877_v28 }
 0x24d   : >> { %4182 = vmatprep.mubr.msk.f32.mxu0 %vm5582_vm4, %v5583_v10 }
 0x250   : >> { %4183 = vmatmul.mubr.msk.f32.gmra.mrb[12].mxu0 %vm697_vm0, %v878_v29 }
 0x251   : >> { %4185 = vmatprep.mubr.msk.f32.mxu0 %vm5582_vm4, %v5583_v10 }
 0x254   : >> { %4186 = vmatmul.mubr.msk.f32.gmra.mrb[14].mxu0 %vm697_vm0, %v879_v30 }
 0x255   : >> { %4192 = vmatprep.mubr.msk.f32.mxu0 %vm5582_vm4, %v5583_v10 }
 0x258   : >> { %4193 = vmatmul.mubr.msk.f32.vlgmr.msra.gmra.mrb[16].mxu0 %vm697_vm0, %v783_v31 }
 0x259   : >> { %4195 = vmatprep.mubr.msk.f32.mxu0 %vm5582_vm4, %v5583_v10  ;;  %4588 = vmatpush3.bf16.msk.msra.mxu0 %vm6055_vm3, %v4583_v20 }
 0x25c   : >> { %4196 = vmatmul.mubr.msk.f32.gmra.mrb[18].mxu0 %vm697_vm0, %v784_v32 }
 0x25d   : >> { %4198 = vmatprep.mubr.msk.f32.mxu0 %vm5582_vm4, %v5583_v10 }
 0x260   : >> { %4199 = vmatmul.mubr.msk.f32.gmra.mrb[20].mxu0 %vm697_vm0, %v785_v33 }
 0x261   : >> { %4217 = vmatprep.mubr.msk.f32.mxu0 %vm697_vm0, %v6034_v0 }
 0x264   : >> { %4218 = vmatmul.mubr.msk.f32.vlgmr.msra.gmra.mrb[22].mxu0 %vm697_vm0, %v6036_v1 }
 0x30f   : >> { %v970_v34 = vpop.f32.mrb[2].mxu0 }
 0x310   : >> { %v4169_v35 = vpop.f32.mrb[3].mxu0 }
 0x311   : >> { %v1109_v36 = vpop.f32.mrb[2].mxu1 }
 0x312   : >> { %v4203_v37 = vpop.f32.mrb[3].mxu1 }
 0x313   : >> { %v975_v38 = vpop.f32.mrb[4].mxu0 }
 0x314   : >> { %v4172_v39 = vpop.f32.mrb[5].mxu0 }
 0x315   : >> { %v1114_v40 = vpop.f32.mrb[4].mxu1 }
 0x316   : >> { %v4206_v41 = vpop.f32.mrb[5].mxu1 }
 0x317   : >> { %v980_v42 = vpop.f32.mrb[6].mxu0 }
 0x318   : >> { %v4175_v43 = vpop.f32.mrb[7].mxu0 }
 0x319   : >> { %v1119_v44 = vpop.f32.mrb[6].mxu1 }
 0x31a   : >> { %v4209_v45 = vpop.f32.mrb[7].mxu1 }
 0x31b   : >> { %v985_v46 = vpop.f32.mrb[8].mxu0 }
 0x31c   : >> { %v6171_v47 = vadd.f32 %v1109_v36, %v985_v46  ;;  %v4178_v48 = vpop.f32.mrb[9].mxu0 }
 0x31d   : >> { %v1124_v49 = vpop.f32.mrb[8].mxu1 }
 0x31e   : >> { %v4212_v50 = vpop.f32.mrb[9].mxu1 }
 0x31f   : >> { %v990_v51 = vpop.f32.mrb[10].mxu0 }
 0x320   : >> { %v6173_v52 = vadd.f32 %v1114_v40, %v990_v51  ;;  %v4181_v53 = vpop.f32.mrb[11].mxu0 }
 0x323   : >> { %v995_v54 = vpop.f32.mrb[12].mxu0 }
 0x324   : >> { %v6175_v55 = vadd.f32 %v1119_v44, %v995_v54  ;;  %v4184_v56 = vpop.f32.mrb[13].mxu0 }
 0x327   : >> { %v1000_v57 = vpop.f32.mrb[14].mxu0 }
 0x328   : >> { %v6177_v58 = vadd.f32 %v1124_v49, %v1000_v57  ;;  %v4187_v59 = vpop.f32.mrb[15].mxu0 }
 0x32b   : >> { %v1094_v60 = vpop.f32.mrb[16].mxu0 }
 0x32c   : >> { %v1095_v61 = vadd.f32 %v1094_v60, %v970_v34  ;;  %v4194_v62 = vpop.f32.mrb[17].mxu0 }
 0x32f   : >> { %v1099_v63 = vpop.f32.mrb[18].mxu0 }
 0x330   : >> { %v1100_v3 = vadd.f32 %v1099_v63, %v975_v38  ;;  %v4197_v4 = vpop.f32.mrb[19].mxu0 }
 0x333   : >> { %v1104_v5 = vpop.f32.mrb[20].mxu0 }
 0x334   : >> { %v1105_v6 = vadd.f32 %v1104_v5, %v980_v42  ;;  %v4200_v7 = vpop.f32.mrb[21].mxu0 }
 0x337   : >> { %v4219_v8 = vpop.f32.mrb[22].mxu0 }
 0x338   : >> { %v1202_v9 = vpop.f32.mrb[23].mxu0 }
 0x339   : >> { %v4590_v11 = vpack.c.bf16 %v4219_v8, %v1202_v9 }
 0x33b   : >> { %4592 = vmatpush3.bf16.msk.msra.mxu1 %vm6055_vm3, %v4590_v11 }
 0x33e   : >> { %4225 = vmatmul.mubr.msk.f32.vlgmr.msra.gmra.mrb[10].mxu1 %vm697_vm0, %v1211_v12 }
 0x33f   : >> { %4227 = vmatprep.mubr.msk.f32.mxu1 %vm5582_vm4, %v5583_v10 }
 0x342   : >> { %4228 = vmatmul.mubr.msk.f32.gmra.mrb[12].mxu1 %vm697_vm0, %v1212_v13 }
 0x343   : >> { %4230 = vmatprep.mubr.msk.f32.mxu1 %vm5582_vm4, %v5583_v10 }
 0x346   : >> { %4231 = vmatmul.mubr.msk.f32.gmra.mrb[14].mxu1 %vm697_vm0, %v1213_v2 }
 0x347   : >> { %4233 = vmatprep.mubr.msk.f32.mxu1 %vm5582_vm4, %v5583_v10 }
 0x34a   : >> { %4234 = vmatmul.mubr.msk.f32.gmra.mrb[16].mxu1 %vm697_vm0, %v1214_v14 }
 0x34b   : >> { %4236 = vmatprep.mubr.msk.f32.mxu1 %vm5582_vm4, %v5583_v10 }
 0x34e   : >> { %4237 = vmatmul.mubr.msk.f32.gmra.mrb[18].mxu1 %vm697_vm0, %v1215_v15 }
 0x34f   : >> { %4239 = vmatprep.mubr.msk.f32.mxu1 %vm5582_vm4, %v5583_v10 }
 0x352   : >> { %4240 = vmatmul.mubr.msk.f32.gmra.mrb[20].mxu1 %vm697_vm0, %v1216_v16 }
 0x353   : >> { %4242 = vmatprep.mubr.msk.f32.mxu1 %vm5582_vm4, %v5583_v10 }
 0x356   : >> { %4243 = vmatmul.mubr.msk.f32.gmra.mrb[22].mxu1 %vm697_vm0, %v1217_v17 }
 0x411   : >> { %v1308_v18 = vpop.f32.mrb[10].mxu1 }
 0x412   : >> { %v1342_v20 = vadd.f32 %v1308_v18, %v1095_v61  ;;  %v4226_v21 = vpop.f32.mrb[11].mxu1 }
 0x414   : >> { %v1356_v22 = vadd.f32 %v3816_v19, %v1342_v20 }
 0x415   : >> { %v1313_v23 = vpop.f32.mrb[12].mxu1 }
 0x416   : >> { %v1363_v24 = vmax.f32 %v1356_v22, 0.0  ;;  %v1343_v25 = vadd.f32 %v1313_v23, %v1100_v3  ;;  %v4229_v26 = vpop.f32.mrb[13].mxu1 }
 0x418   : >> { %1373 = vst.msk [vmem:[%s6222_s0] sm:$0xff] %vm1372_vm5, %v1363_v24  ;;  %v1357_v10 = vadd.f32 %v3816_v19, %v1343_v25 }
 0x419   : >> { %v1318_v27 = vpop.f32.mrb[14].mxu1 }
 0x41a   : >> { %v1364_v28 = vmax.f32 %v1357_v10, 0.0  ;;  %v1344_v29 = vadd.f32 %v1318_v27, %v1105_v6  ;;  %v4232_v30 = vpop.f32.mrb[15].mxu1 }
 0x41c   : >> { %1374 = vst.msk [vmem:[%s6222_s0 + $0x8] sm:$0xff] %vm1372_vm5, %v1364_v28  ;;  %v1358_v31 = vadd.f32 %v3816_v19, %v1344_v29 }
 0x41d   : >> { %v1323_v32 = vpop.f32.mrb[16].mxu1 }
 0x41e   : >> { %v1365_v33 = vmax.f32 %v1358_v31, 0.0  ;;  %v1345_v34 = vadd.f32 %v1323_v32, %v6171_v47  ;;  %v4235_v35 = vpop.f32.mrb[17].mxu1 }
 0x420   : >> { %1375 = vst.msk [vmem:[%s6222_s0 + $0x10] sm:$0xff] %vm1372_vm5, %v1365_v33  ;;  %v1359_v36 = vadd.f32 %v3816_v19, %v1345_v34 }
 0x421   : >> { %v1328_v37 = vpop.f32.mrb[18].mxu1 }
 0x422   : >> { %v1366_v38 = vmax.f32 %v1359_v36, 0.0  ;;  %v1346_v39 = vadd.f32 %v1328_v37, %v6173_v52  ;;  %v4238_v40 = vpop.f32.mrb[19].mxu1 }
 0x424   : >> { %1376 = vst.msk [vmem:[%s6222_s0 + $0x18] sm:$0xff] %vm1372_vm5, %v1366_v38  ;;  %v1360_v41 = vadd.f32 %v3816_v19, %v1346_v39 }
 0x425   : >> { %v1333_v42 = vpop.f32.mrb[20].mxu1 }
 0x426   : >> { %v1367_v43 = vmax.f32 %v1360_v41, 0.0  ;;  %v1347_v44 = vadd.f32 %v1333_v42, %v6175_v55  ;;  %v4241_v45 = vpop.f32.mrb[21].mxu1 }
 0x428   : >> { %1377 = vst.msk [vmem:[%s6222_s0 + $0x20] sm:$0xff] %vm1372_vm5, %v1367_v43  ;;  %v1361_v46 = vadd.f32 %v3816_v19, %v1347_v44 }
 0x429   : >> { %v1338_v47 = vpop.f32.mrb[22].mxu1 }
 0x42a   : >> { %v1368_v48 = vmax.f32 %v1361_v46, 0.0  ;;  %v1348_v49 = vadd.f32 %v1338_v47, %v6177_v58  ;;  %v4244_v50 = vpop.f32.mrb[23].mxu1  ;;  %690 = sbr.rel (!%p688_p0) target bundleno = 340 (0x154), region = 248 }
 0x42c   : >> { %1378 = vst.msk [vmem:[%s6222_s0 + $0x28] sm:$0xff] %vm1372_vm5, %v1368_v48  ;;  %v1362_v51 = vadd.f32 %v3816_v19, %v1348_v49 }
 0x42e   : >> { %v1369_v52 = vmax.f32 %v1362_v51, 0.0 }
 0x430   : >> { %1380 = vst.msk [vmem:[%s6222_s0 + $0x30] sm:$0x3f] %vm1379_vm6, %v1369_v52 }
 0x431 LB: >> { %v1414_v53 = vld [vmem:[#allocation16] sm:$0xff]  ;;  %vm1418_vm7 = vcmask 441344   ;;  %s1387_s18 = smul.u32 108, %s5544_s24  ;;  %vm1431_vm8 = vcmask 1045504   ;;  %v1415_v16 = vld [vmem:[#allocation16 + $0x8] sm:$0xff]  ;;  %v1416_v18 = vld [vmem:[#allocation16 + $0x10] sm:$0xff]  ;;  %s5544_s24 = sphi %s6244_s24, %s1386_s24  }
 0x432   : >> { %v1520_v54 = vld [vmem:[#allocation18] sm:$0xff]  ;;  %4259 = vmatprep.mubr.msk.f32.mxu0 %vm1418_vm7, %v1414_v53  ;;  %v1521_v17 = vld [vmem:[#allocation18 + $0x8] sm:$0xff]  ;;  %v1522_v19 = vld [vmem:[#allocation18 + $0x10] sm:$0xff]  ;;  %s1625_s21 = smul.u32 27, %s5544_s24  ;;  %vm1631_vm9 = vcmask 256000   ;;  %s1386_s24 = sadd.s32 1, %s5544_s24  }
 0x433   : >> { %4279 = vmatprep.mubr.msk.f32.mxu1 %vm1418_vm7, %v1520_v54  ;;  %s1388_s26 = scalar_lea.vmem [#allocation2], %s1387_s18  ;;  %v1417_v20 = vld [vmem:[#allocation16 + $0x18] sm:$0x7]  ;;  %p1383_p2 = scmp.ge.s32.totalorder %s1386_s24, 27  }
 0x434   : >> { %v1523_v21 = vld [vmem:[#allocation18 + $0x18] sm:$0x7]  ;;  %s1626_s27 = scalar_lea.vmem [#allocation3], %s1625_s21  ;;  %s6265_s28 = smov (%p1383_p2), 0  }
 0x437   : >> { %v1389_v55 = vld [vmem:[%s1388_s26] sm:$0xff]  ;;  %v1390_v56 = vld [vmem:[%s1388_s26 + $0x8] sm:$0xff]  ;;  %v3819_v57 = vld [vmem:[%s1388_s26 + $0x36] sm:$0xff] }
 0x438   : >> { %v3820_v0 = vld [vmem:[%s1388_s26 + $0x3e] sm:$0xff]  ;;  %v1407_v1 = vmax.f32 %v1389_v55, %v3819_v57  ;;  %v1391_v58 = vld [vmem:[%s1388_s26 + $0x10] sm:$0xff]  ;;  %v3821_v61 = vld [vmem:[%s1388_s26 + $0x46] sm:$0xff] }
 0x439   : >> { %v1392_v59 = vld [vmem:[%s1388_s26 + $0x18] sm:$0xff]  ;;  %v1408_v60 = vmax.f32 %v1390_v56, %v3820_v0  ;;  %v3822_v62 = vld [vmem:[%s1388_s26 + $0x4e] sm:$0xff]  ;;  %v1393_v63 = vld [vmem:[%s1388_s26 + $0x20] sm:$0xff]  ;;  %v1409_v3 = vmax.f32 %v1391_v58, %v3821_v61 }
 0x43a   : >> { %v1410_v4 = vmax.f32 %v1392_v59, %v3822_v62  ;;  %v1394_v5 = vld [vmem:[%s1388_s26 + $0x28] sm:$0xff]  ;;  %v3823_v6 = vld [vmem:[%s1388_s26 + $0x56] sm:$0xff]  ;;  %v3824_v7 = vld [vmem:[%s1388_s26 + $0x5e] sm:$0xff] }
 0x43b   : >> { %v4593_v8 = vpack.c.bf16 %v1408_v60, %v1407_v1  ;;  %v1411_v9 = vmax.f32 %v1393_v63, %v3823_v6  ;;  %v1412_v11 = vmax.f32 %v1394_v5, %v3824_v7  ;;  %v1395_v2 = vld [vmem:[%s1388_s26 + $0x30] sm:$0x3f]  ;;  %v3825_v14 = vld [vmem:[%s1388_s26 + $0x66] sm:$0x3f] }
 0x43c   : >> { %v4597_v12 = vpack.c.bf16 %v1410_v4, %v1409_v3  ;;  %v1413_v15 = vmax.f32 %v1395_v2, %v3825_v14 }
 0x43d   : >> { %4594 = vmatprep.subr.bf16.mxu0 %v4593_v8  ;;  %4606 = vmatprep.subr.bf16.mxu1 %v4593_v8  ;;  %v4601_v13 = vpack.c.bf16 %v1412_v11, %v1411_v9 }
 0x43e   : >> { %4596 = vmatpush3.bf16.msra.mxu0 %v4593_v8  ;;  %4608 = vmatpush3.bf16.msra.mxu1 %v4593_v8 }
 0x43f   : >> { %4598 = vmatprep.subr.bf16.mxu0 %v4597_v12  ;;  %4610 = vmatprep.subr.bf16.mxu1 %v4597_v12 }
 0x442   : >> { %4600 = vmatpush3.bf16.msra.mxu0 %v4597_v12  ;;  %4612 = vmatpush3.bf16.msra.mxu1 %v4597_v12 }
 0x443   : >> { %4602 = vmatprep.subr.bf16.mxu0 %v4601_v13  ;;  %4614 = vmatprep.subr.bf16.mxu1 %v4601_v13 }
 0x446   : >> { %4604 = vmatpush3.bf16.msra.mxu0 %v4601_v13  ;;  %4616 = vmatpush3.bf16.msra.mxu1 %v4601_v13 }
 0x447   : >> { %4257 = vmatprep.subr.msk.mxu0 %vm1431_vm8, %v1413_v15  ;;  %4277 = vmatprep.subr.msk.mxu1 %vm1431_vm8, %v1413_v15 }
 0x44a   : >> { %4258 = vmatpush3.msk.msra.mxu0 %vm1431_vm8, %v1413_v15  ;;  %4278 = vmatpush3.msk.msra.mxu1 %vm1431_vm8, %v1413_v15 }
 0x44b   : >> { %4260 = vmatmul.mubr.msk.f32.vlgmr.msra.gmra.mrb[0].mxu0 %vm1418_vm7, %v1415_v16  ;;  %4280 = vmatmul.mubr.msk.f32.vlgmr.msra.gmra.mrb[0].mxu1 %vm1418_vm7, %v1521_v17 }
 0x44c   : >> { %4262 = vmatprep.mubr.msk.f32.mxu0 %vm1418_vm7, %v1416_v18  ;;  %4282 = vmatprep.mubr.msk.f32.mxu1 %vm1418_vm7, %v1522_v19 }
 0x44f   : >> { %4263 = vmatmul.mubr.msk.f32.gmra.mrb[2].mxu0 %vm1418_vm7, %v1417_v20  ;;  %4283 = vmatmul.mubr.msk.f32.gmra.mrb[2].mxu1 %vm1418_vm7, %v1523_v21 }
 0x51e   : >> { %v4261_v22 = vpop.f32.mrb[0].mxu0  ;;  %v4281_v23 = vpop.f32.mrb[0].mxu1 }
 0x51f   : >> { %v1622_v24 = vmax.f32 %v4261_v22, %v4281_v23  ;;  %v1501_v25 = vpop.f32.mrb[1].mxu0  ;;  %v1602_v26 = vpop.f32.mrb[1].mxu1 }
 0x520   : >> { %v1621_v10 = vmax.f32 %v1501_v25, %v1602_v26  ;;  %1385 = sbr.rel (!%p1383_p2) target bundleno = 1073 (0x431), region = 259 }
 0x521   : >> { %1629 = vst.msk [vmem:[%s1626_s27 + $0x8] sm:$0xff] %vm1372_vm5, %v1622_v24 }
 0x522   : >> { %1628 = vst.msk [vmem:[%s1626_s27] sm:$0xff] %vm1372_vm5, %v1621_v10  ;;  %v4264_v27 = vpop.f32.mrb[2].mxu0  ;;  %v4284_v28 = vpop.f32.mrb[2].mxu1 }
 0x523   : >> { %v1624_v29 = vmax.f32 %v4264_v27, %v4284_v28  ;;  %v1511_v30 = vpop.f32.mrb[3].mxu0  ;;  %v1612_v31 = vpop.f32.mrb[3].mxu1 }
 0x524   : >> { %v1623_v32 = vmax.f32 %v1511_v30, %v1612_v31 }
 0x525   : >> { %1632 = vst.msk [vmem:[%s1626_s27 + $0x18] sm:$0x7] %vm1631_vm9, %v1624_v29 }
 0x526   : >> { %1630 = vst.msk [vmem:[%s1626_s27 + $0x10] sm:$0xff] %vm1372_vm5, %v1623_v32 }
 0x527 LB: >> { %v1656_v33 = vld [vmem:[#allocation10 + $0x20] sm:$0xff]  ;;  %v1657_v34 = vld [vmem:[#allocation10 + $0x28] sm:$0xff]  ;;  %v1658_v38 = vld [vmem:[#allocation10 + $0x30] sm:$0xff]  ;;  %s1639_s30 = smul.u32 27, %s5548_s28  ;;  %vm2662_vm10 = vcmask 516096   ;;  %vm2658_vm11 = vcmask 523264   ;;  %s5548_s28 = sphi %s6265_s28, %s1638_s28  }
 0x528   : >> { %v2087_v35 = vld [vmem:[#allocation10 + $0x80] sm:$0xff]  ;;  %v4617_v36 = vpack.c.bf16 %v1657_v34, %v1656_v33  ;;  %v2088_v37 = vld [vmem:[#allocation10 + $0x88] sm:$0xff]  ;;  %v1659_v39 = vld [vmem:[#allocation10 + $0x38] sm:$0xff]  ;;  %s2656_s29 = smul.u32 25, %s5548_s28  ;;  %s1638_s28 = sadd.s32 1, %s5548_s28  }
 0x529   : >> { %v4649_v40 = vpack.c.bf16 %v2088_v37, %v2087_v35  ;;  %v4621_v41 = vpack.c.bf16 %v1659_v39, %v1658_v38  ;;  %v2089_v42 = vld [vmem:[#allocation10 + $0x90] sm:$0xff]  ;;  %v2090_v43 = vld [vmem:[#allocation10 + $0x98] sm:$0xff]  ;;  %v1645_v44 = vld [vmem:[#allocation10] sm:$0xff]  ;;  %s6271_s4 = scalar_lea.vmem [#allocation3], %s1639_s30  ;;  %p1635_p3 = scmp.ge.s32.totalorder %s1638_s28, 25  }
 0x52a   : >> { %4618 = vmatprep.subr.bf16.mxu1 %v4617_v36  ;;  %v4653_v45 = vpack.c.bf16 %v2090_v43, %v2089_v42  ;;  %v1646_v46 = vld [vmem:[#allocation10 + $0x8] sm:$0xff]  ;;  %v2199_v47 = vld [vmem:[#allocation10 + $0xa0] sm:$0xff]  ;;  %v1647_v53 = vld [vmem:[#allocation10 + $0x10] sm:$0xff]  ;;  %s2657_s14 = scalar_lea.vmem [#allocation4], %s2656_s29  ;;  %s6352_s17 = smov (%p1635_p3), 0  }
 0x52b   : >> { %v2200_v48 = vld [vmem:[#allocation10 + $0xa8] sm:$0xff]  ;;  %4650 = vmatprep.subr.bf16.mxu0 %v4649_v40  ;;  %4620 = vmatpush3.bf16.msra.mxu1 %v4617_v36  ;;  %v4625_v51 = vpack.c.bf16 %v1646_v46, %v1645_v44  ;;  %v1648_v54 = vld [vmem:[#allocation10 + $0x18] sm:$0xff]  ;;  %v2201_v56 = vld [vmem:[#allocation10 + $0xb0] sm:$0xff] }
 0x52c   : >> { %4652 = vmatpush3.bf16.msra.mxu0 %v4649_v40  ;;  %4622 = vmatprep.subr.bf16.mxu1 %v4621_v41  ;;  %v4657_v52 = vpack.c.bf16 %v2200_v48, %v2199_v47  ;;  %v2202_v57 = vld [vmem:[#allocation10 + $0xb8] sm:$0xff]  ;;  %v4629_v58 = vpack.c.bf16 %v1648_v54, %v1647_v53  ;;  %v1862_v61 = vld [vmem:[#allocation10 + $0x40] sm:$0xff]  ;;  %v1863_v62 = vld [vmem:[#allocation10 + $0x48] sm:$0xff] }
 0x52d   : >> { %v3836_v49 = vld [vmem:[%s6271_s4 + $0x1] sm:$0xff]  ;;  %4654 = vmatprep.subr.bf16.mxu0 %v4653_v45  ;;  %v3837_v55 = vld [vmem:[%s6271_s4 + $0x9] sm:$0xff]  ;;  %v3838_v1 = vld [vmem:[%s6271_s4 + $0x11] sm:$0xff]  ;;  %v4661_v60 = vpack.c.bf16 %v2202_v57, %v2201_v56  ;;  %v4633_v7 = vpack.c.bf16 %v1863_v62, %v1862_v61 }
 0x52e   : >> { %v3864_v50 = vld [vmem:[%s6271_s4 + $0x1c] sm:$0xff]  ;;  %4293 = vmatprep.mubr.msk.f32.mxu1 %vm1372_vm5, %v3836_v49  ;;  %v3865_v0 = vld [vmem:[%s6271_s4 + $0x24] sm:$0xff]  ;;  %v3866_v59 = vld [vmem:[%s6271_s4 + $0x2c] sm:$0xff] }
 0x52f   : >> { %4349 = vmatprep.mubr.msk.f32.mxu0 %vm1372_vm5, %v3864_v50  ;;  %4624 = vmatpush3.bf16.msra.mxu1 %v4621_v41  ;;  %v3839_v63 = vld [vmem:[%s6271_s4 + $0x19] sm:$0x1]  ;;  %v2313_v4 = vld [vmem:[#allocation10 + $0xc8] sm:$0xff]  ;;  %v3867_v5 = vld [vmem:[%s6271_s4 + $0x34] sm:$0x1] }
 0x530   : >> { %4656 = vmatpush3.bf16.msra.mxu0 %v4653_v45  ;;  %4626 = vmatprep.subr.bf16.mxu1 %v4625_v51  ;;  %v2312_v3 = vld [vmem:[#allocation10 + $0xc0] sm:$0xff]  ;;  %v1641_v6 = vld [vmem:[%s6271_s4] sm:$0xff]  ;;  %v1865_v12 = vld [vmem:[#allocation10 + $0x58] sm:$0xff] }
 0x531   : >> { %4658 = vmatprep.subr.bf16.mxu0 %v4657_v52  ;;  %v3872_v8 = vld [vmem:[%s6271_s4 + $0x1d] sm:$0xff]  ;;  %v4665_v9 = vpack.c.bf16 %v2313_v4, %v2312_v3  ;;  %v1642_v13 = vld [vmem:[%s6271_s4 + $0x8] sm:$0xff]  ;;  %v1643_v16 = vld [vmem:[%s6271_s4 + $0x10] sm:$0xff] }
 0x532   : >> { %4294 = vmatmul.mubr.msk.f32.vlgmr.msra.gmra.mrb[0].mxu1 %vm1372_vm5, %v3837_v55  ;;  %v1864_v11 = vld [vmem:[#allocation10 + $0x50] sm:$0xff]  ;;  %v2315_v14 = vld [vmem:[#allocation10 + $0xd8] sm:$0xff]  ;;  %v1975_v20 = vld [vmem:[#allocation10 + $0x60] sm:$0xff] }
 0x533   : >> { %4350 = vmatmul.mubr.msk.f32.vlgmr.msra.gmra.mrb[0].mxu0 %vm1372_vm5, %v3865_v0  ;;  %4628 = vmatpush3.bf16.msra.mxu1 %v4625_v51  ;;  %v2314_v2 = vld [vmem:[#allocation10 + $0xd0] sm:$0xff]  ;;  %v4637_v17 = vpack.c.bf16 %v1865_v12, %v1864_v11  ;;  %v3874_v18 = vld [vmem:[%s6271_s4 + $0x2d] sm:$0xff]  ;;  %v1976_v21 = vld [vmem:[#allocation10 + $0x68] sm:$0xff] }
 0x534   : >> { %4660 = vmatpush3.bf16.msra.mxu0 %v4657_v52  ;;  %4296 = vmatprep.mubr.msk.f32.mxu1 %vm1372_vm5, %v3838_v1  ;;  %v3873_v15 = vld [vmem:[%s6271_s4 + $0x25] sm:$0xff]  ;;  %v4669_v19 = vpack.c.bf16 %v2315_v14, %v2314_v2  ;;  %v1644_v22 = vld [vmem:[%s6271_s4 + $0x18] sm:$0x1]  ;;  %v2425_v24 = vld [vmem:[#allocation10 + $0xe8] sm:$0xff]  ;;  %v4641_v10 = vpack.c.bf16 %v1976_v21, %v1975_v20 }
 0x535   : >> { %4352 = vmatprep.mubr.msk.f32.mxu0 %vm1372_vm5, %v3866_v59  ;;  %4630 = vmatprep.subr.bf16.mxu1 %v4629_v58  ;;  %v2424_v23 = vld [vmem:[#allocation10 + $0xe0] sm:$0xff]  ;;  %v3848_v26 = vld [vmem:[%s6271_s4 + $0x2] sm:$0xff]  ;;  %v1978_v30 = vld [vmem:[#allocation10 + $0x78] sm:$0xff] }
 0x536   : >> { %4297 = vmatmul.mubr.msk.f32.gmra.mrb[2].mxu1 %vm1372_vm5, %v3839_v63  ;;  %4662 = vmatprep.subr.bf16.mxu0 %v4661_v60  ;;  %v3875_v25 = vld [vmem:[%s6271_s4 + $0x35] sm:$0x1]  ;;  %v3880_v27 = vld [vmem:[%s6271_s4 + $0x36] sm:$0xff]  ;;  %v4673_v28 = vpack.c.bf16 %v2425_v24, %v2424_v23  ;;  %v1977_v29 = vld [vmem:[#allocation10 + $0x70] sm:$0xff] }
 0x537   : >> { %4353 = vmatmul.mubr.msk.f32.gmra.mrb[2].mxu0 %vm1372_vm5, %v3867_v5  ;;  %4632 = vmatpush3.bf16.msra.mxu1 %v4629_v58  ;;  %v3849_v31 = vld [vmem:[%s6271_s4 + $0xa] sm:$0xff]  ;;  %v2426_v32 = vld [vmem:[#allocation10 + $0xf0] sm:$0xff]  ;;  %v3850_v35 = vld [vmem:[%s6271_s4 + $0x12] sm:$0xff]  ;;  %v4645_v36 = vpack.c.bf16 %v1978_v30, %v1977_v29 }
 0x538   : >> { %4664 = vmatpush3.bf16.msra.mxu0 %v4661_v60  ;;  %4307 = vmatprep.mubr.msk.f32.mxu1 %vm1372_vm5, %v1641_v6  ;;  %v2427_v33 = vld [vmem:[#allocation10 + $0xf8] sm:$0xff]  ;;  %v3881_v34 = vld [vmem:[%s6271_s4 + $0x3e] sm:$0xff]  ;;  %v2536_v39 = vld [vmem:[#allocation10 + $0x100] sm:$0xff] }
 0x539   : >> { %4363 = vmatprep.mubr.msk.f32.mxu0 %vm1372_vm5, %v3872_v8  ;;  %4634 = vmatprep.subr.bf16.mxu1 %v4633_v7  ;;  %v3882_v37 = vld [vmem:[%s6271_s4 + $0x46] sm:$0xff]  ;;  %v4677_v38 = vpack.c.bf16 %v2427_v33, %v2426_v32  ;;  %v2537_v40 = vld [vmem:[#allocation10 + $0x108] sm:$0xff]  ;;  %v3883_v42 = vld [vmem:[%s6271_s4 + $0x4e] sm:$0x1] }
 0x53a   : >> { %4308 = vmatmul.mubr.msk.f32.vlgmr.msra.gmra.mrb[0].mxu1 %vm1372_vm5, %v1642_v13  ;;  %4666 = vmatprep.subr.bf16.mxu0 %v4665_v9  ;;  %v3851_v41 = vld [vmem:[%s6271_s4 + $0x1a] sm:$0x1]  ;;  %v3856_v43 = vld [vmem:[%s6271_s4 + $0x1b] sm:$0xff]  ;;  %v4681_v44 = vpack.c.bf16 %v2537_v40, %v2536_v39  ;;  %v2539_v47 = vld [vmem:[#allocation10 + $0x118] sm:$0xff] }
 0x53b   : >> { %4364 = vmatmul.mubr.msk.f32.vlgmr.msra.gmra.mrb[0].mxu0 %vm1372_vm5, %v3873_v15  ;;  %4636 = vmatpush3.bf16.msra.mxu1 %v4633_v7  ;;  %v3888_v45 = vld [vmem:[%s6271_s4 + $0x37] sm:$0xff]  ;;  %v2538_v46 = vld [vmem:[#allocation10 + $0x110] sm:$0xff]  ;;  %v3858_v50 = vld [vmem:[%s6271_s4 + $0x2b] sm:$0xff] }
 0x53c   : >> { %4668 = vmatpush3.bf16.msra.mxu0 %v4665_v9  ;;  %4310 = vmatprep.mubr.msk.f32.mxu1 %vm1372_vm5, %v1643_v16  ;;  %v3857_v48 = vld [vmem:[%s6271_s4 + $0x23] sm:$0xff]  ;;  %v4685_v51 = vpack.c.bf16 %v2539_v47, %v2538_v46  ;;  %v3859_v53 = vld [vmem:[%s6271_s4 + $0x33] sm:$0x1]  ;;  %v3891_v54 = vld [vmem:[%s6271_s4 + $0x4f] sm:$0x1] }
 0x53d   : >> { %4366 = vmatprep.mubr.msk.f32.mxu0 %vm1372_vm5, %v3874_v18  ;;  %4638 = vmatprep.subr.bf16.mxu1 %v4637_v17  ;;  %v3889_v49 = vld [vmem:[%s6271_s4 + $0x3f] sm:$0xff]  ;;  %v3890_v52 = vld [vmem:[%s6271_s4 + $0x47] sm:$0xff]  ;;  %v3899_v57 = vld [vmem:[%s6271_s4 + $0x50] sm:$0x1] }
 0x53e   : >> { %4311 = vmatmul.mubr.msk.f32.gmra.mrb[2].mxu1 %vm1372_vm5, %v1644_v22  ;;  %4670 = vmatprep.subr.bf16.mxu0 %v4669_v19  ;;  %v3896_v55 = vld [vmem:[%s6271_s4 + $0x38] sm:$0xff]  ;;  %v3898_v56 = vld [vmem:[%s6271_s4 + $0x48] sm:$0xff]  ;;  %v3897_v0 = vld [vmem:[%s6271_s4 + $0x40] sm:$0xff] }
 0x53f   : >> { %4367 = vmatmul.mubr.msk.f32.gmra.mrb[2].mxu0 %vm1372_vm5, %v3875_v25  ;;  %4640 = vmatpush3.bf16.msra.mxu1 %v4637_v17  ;;  %v3904_v4 = vld [vmem:[#allocation12] ss:$0 sm:$0xff] }
 0x540   : >> { %4672 = vmatpush3.bf16.msra.mxu0 %v4669_v19  ;;  %4321 = vmatprep.mubr.msk.f32.mxu1 %vm1372_vm5, %v3848_v26 }
 0x541   : >> { %4377 = vmatprep.mubr.msk.f32.mxu0 %vm1372_vm5, %v3880_v27  ;;  %4642 = vmatprep.subr.bf16.mxu1 %v4641_v10 }
 0x542   : >> { %4322 = vmatmul.mubr.msk.f32.vlgmr.msra.gmra.mrb[0].mxu1 %vm1372_vm5, %v3849_v31  ;;  %4674 = vmatprep.subr.bf16.mxu0 %v4673_v28 }
 0x543   : >> { %4378 = vmatmul.mubr.msk.f32.vlgmr.msra.gmra.mrb[0].mxu0 %vm1372_vm5, %v3881_v34  ;;  %4644 = vmatpush3.bf16.msra.mxu1 %v4641_v10 }
 0x544   : >> { %4676 = vmatpush3.bf16.msra.mxu0 %v4673_v28  ;;  %4324 = vmatprep.mubr.msk.f32.mxu1 %vm1372_vm5, %v3850_v35 }
 0x545   : >> { %4380 = vmatprep.mubr.msk.f32.mxu0 %vm1372_vm5, %v3882_v37  ;;  %4646 = vmatprep.subr.bf16.mxu1 %v4645_v36 }
 0x546   : >> { %4325 = vmatmul.mubr.msk.f32.gmra.mrb[2].mxu1 %vm1372_vm5, %v3851_v41  ;;  %4678 = vmatprep.subr.bf16.mxu0 %v4677_v38 }
 0x547   : >> { %4381 = vmatmul.mubr.msk.f32.gmra.mrb[2].mxu0 %vm1372_vm5, %v3883_v42  ;;  %4648 = vmatpush3.bf16.msra.mxu1 %v4645_v36 }
 0x548   : >> { %4680 = vmatpush3.bf16.msra.mxu0 %v4677_v38  ;;  %4335 = vmatprep.mubr.msk.f32.mxu1 %vm1372_vm5, %v3856_v43 }
 0x549   : >> { %4391 = vmatprep.mubr.msk.f32.mxu0 %vm1372_vm5, %v3888_v45  ;;  %4682 = vmatprep.subr.bf16.mxu0 %v4681_v44 }
 0x54a   : >> { %4336 = vmatmul.mubr.msk.f32.vlgmr.msra.gmra.mrb[0].mxu1 %vm1372_vm5, %v3857_v48  ;;  %4811 = vmatprep.subr.bf16.mxu1 %v4681_v44 }
 0x54b   : >> { %4392 = vmatmul.mubr.msk.f32.vlgmr.msra.gmra.mrb[0].mxu0 %vm1372_vm5, %v3889_v49  ;;  %4813 = vmatpush3.bf16.msra.mxu1 %v4681_v44 }
 0x54c   : >> { %4684 = vmatpush3.bf16.msra.mxu0 %v4681_v44  ;;  %4338 = vmatprep.mubr.msk.f32.mxu1 %vm1372_vm5, %v3858_v50 }
 0x54d   : >> { %4394 = vmatprep.mubr.msk.f32.mxu0 %vm1372_vm5, %v3890_v52  ;;  %4686 = vmatprep.subr.bf16.mxu0 %v4685_v51 }
 0x54e   : >> { %4339 = vmatmul.mubr.msk.f32.gmra.mrb[2].mxu1 %vm1372_vm5, %v3859_v53  ;;  %4812 = vmatprep.subr.bf16.mxu1 %v4685_v51 }
 0x54f   : >> { %4395 = vmatmul.mubr.msk.f32.gmra.mrb[2].mxu0 %vm1372_vm5, %v3891_v54  ;;  %4814 = vmatpush3.bf16.msra.mxu1 %v4685_v51 }
 0x550   : >> { %4688 = vmatpush3.bf16.msra.mxu0 %v4685_v51  ;;  %4405 = vmatprep.mubr.msk.f32.mxu0 %vm1372_vm5, %v3896_v55 }
 0x551   : >> { %4408 = vmatprep.mubr.msk.f32.mxu1 %vm1372_vm5, %v3898_v56 }
 0x552   : >> { %4409 = vmatmul.mubr.msk.f32.vlgmr.msra.gmra.mrb[4].mxu1 %vm1372_vm5, %v3899_v57 }
 0x553   : >> { %4406 = vmatmul.mubr.msk.f32.vlgmr.msra.gmra.mrb[0].mxu0 %vm1372_vm5, %v3897_v0 }
 0x61d   : >> { %v4337_v1 = vpop.f32.mrb[0].mxu1 }
 0x61e   : >> { %v2057_v58 = vpop.f32.mrb[1].mxu1 }
 0x621   : >> { %v4340_v59 = vpop.f32.mrb[2].mxu1 }
 0x622   : >> { %v4396_v60 = vpop.f32.mrb[2].mxu0  ;;  %v2067_v61 = vpop.f32.mrb[3].mxu1 }
 0x623   : >> { %v4817_v62 = vadd.f32 %v4396_v60, %v4340_v59  ;;  %v2516_v63 = vpop.f32.mrb[3].mxu0 }
 0x624   : >> { %v4819_v3 = vadd.f32 %v2516_v63, %v2067_v61 }
 0x625   : >> { %v4410_v5 = vpop.f32.mrb[4].mxu1 }
 0x626   : >> { %v4407_v6 = vpop.f32.mrb[0].mxu0  ;;  %v4818_v7 = vadd.f32 %v4817_v62, %v4410_v5  ;;  %v2628_v8 = vpop.f32.mrb[5].mxu1 }
 0x627   : >> { %v4815_v9 = vadd.f32 %v4407_v6, %v4337_v1  ;;  %v2618_v11 = vpop.f32.mrb[1].mxu0  ;;  %v4820_v12 = vadd.f32 %v4819_v3, %v2628_v8 }
 0x628   : >> { %v2651_v13 = vadd.f32 %v4818_v7, %v3904_v4  ;;  %v4816_v2 = vadd.f32 %v2618_v11, %v2057_v58  ;;  %1637 = sbr.rel (!%p1635_p3) target bundleno = 1319 (0x527), region = 270 }
 0x629   : >> { %v2649_v14 = vadd.f32 %v4815_v9, %v3904_v4  ;;  %v2650_v15 = vadd.f32 %v4820_v12, %v3904_v4 }
 0x62a   : >> { %v2655_v16 = vmax.f32 %v2651_v13, 0.0  ;;  %v2648_v17 = vadd.f32 %v4816_v2, %v3904_v4 }
 0x62b   : >> { %v2653_v18 = vmax.f32 %v2649_v14, 0.0  ;;  %v2654_v19 = vmax.f32 %v2650_v15, 0.0 }
 0x62c   : >> { %2663 = vst.msk [vmem:[%s2657_s14 + $0x18] sm:$0x1] %vm2662_vm10, %v2655_v16  ;;  %v2652_v20 = vmax.f32 %v2648_v17, 0.0 }
 0x62d   : >> { %2660 = vst.msk [vmem:[%s2657_s14 + $0x8] sm:$0xff] %vm2658_vm11, %v2653_v18  ;;  %2661 = vst.msk [vmem:[%s2657_s14 + $0x10] sm:$0xff] %vm2658_vm11, %v2654_v19 }
 0x62e   : >> { %2659 = vst.msk [vmem:[%s2657_s14] sm:$0xff] %vm2658_vm11, %v2652_v20 }
 0x62f LB: >> { %v2688_v21 = vld [vmem:[#allocation19] sm:$0xff]  ;;  %vm2690_vm12 = vcmask 203776   ;;  %v2776_v22 = vld [vmem:[#allocation21] sm:$0xff]  ;;  %s2670_s1 = smul.u32 50, %s5552_s17  ;;  %vm2697_vm13 = vcmask 1040384   ;;  %vm5584_vm14 = vmmov 1   ;;  %s5552_s17 = sphi %s6352_s17, %s2669_s17  }
 0x630   : >> { %4419 = vmatprep.mubr.msk.f32.mxu0 %vm2690_vm12, %v2688_v21  ;;  %4430 = vmatprep.mubr.msk.f32.mxu1 %vm2690_vm12, %v2776_v22  ;;  %vm4694_vm15 = vmpackc.low %vm2697_vm13, %vm5584_vm14  ;;  %v2689_v36 = vld [vmem:[#allocation19 + $0x8] sm:$0xf]  ;;  %v2777_v37 = vld [vmem:[#allocation21 + $0x8] sm:$0xf]  ;;  %s2861_s20 = smul.u32 12, %s5552_s17  ;;  %vm2865_vm0 = vcmask 519168  }
 0x631   : >> { %s2671_s23 = scalar_lea.vmem [#allocation4], %s2670_s1  ;;  %s2669_s17 = sadd.s32 1, %s5552_s17  }
 0x632   : >> { %s2862_s0 = scalar_lea.vmem [#allocation5], %s2861_s20  ;;  %p2666_p4 = scmp.ge.s32.totalorder %s2669_s17, 12  }
 0x633   : > { %s6367_s24 = smov (%p2666_p4), 0  }
 0x635   : >> { %v2672_v23 = vld [vmem:[%s2671_s23] sm:$0xff]  ;;  %v2673_v24 = vld [vmem:[%s2671_s23 + $0x8] sm:$0xff]  ;;  %v2674_v27 = vld [vmem:[%s2671_s23 + $0x10] sm:$0xff] }
 0x636   : >> { %v3907_v25 = vld [vmem:[%s2671_s23 + $0x19] sm:$0xff]  ;;  %v3908_v26 = vld [vmem:[%s2671_s23 + $0x21] sm:$0xff]  ;;  %v2675_v28 = vld [vmem:[%s2671_s23 + $0x18] sm:$0x1] }
 0x637   : >> { %v2684_v10 = vmax.f32 %v2672_v23, %v3907_v25  ;;  %v2685_v29 = vmax.f32 %v2673_v24, %v3908_v26  ;;  %v3909_v30 = vld [vmem:[%s2671_s23 + $0x29] sm:$0xff]  ;;  %v3910_v31 = vld [vmem:[%s2671_s23 + $0x31] sm:$0x1] }
 0x638   : >> { %v2686_v32 = vmax.f32 %v2674_v27, %v3909_v30  ;;  %v2687_v33 = vmax.f32 %v2675_v28, %v3910_v31 }
 0x639   : >> { %v4689_v34 = vpack.c.bf16 %v2685_v29, %v2684_v10 }
 0x63a   : >> { %v4693_v35 = vpack.c.bf16 %v2687_v33, %v2686_v32 }
 0x63b   : >> { %4690 = vmatprep.subr.bf16.mxu0 %v4689_v34  ;;  %4700 = vmatprep.subr.bf16.mxu1 %v4689_v34 }
 0x63c   : >> { %4692 = vmatpush3.bf16.msra.mxu0 %v4689_v34  ;;  %4702 = vmatpush3.bf16.msra.mxu1 %v4689_v34 }
 0x63d   : >> { %4695 = vmatprep.subr.msk.bf16.mxu0 %vm4694_vm15, %v4693_v35  ;;  %4705 = vmatprep.subr.msk.bf16.mxu1 %vm4694_vm15, %v4693_v35 }
 0x640   : >> { %4698 = vmatpush3.bf16.msk.msra.mxu0 %vm4694_vm15, %v4693_v35  ;;  %4708 = vmatpush3.bf16.msk.msra.mxu1 %vm4694_vm15, %v4693_v35 }
 0x643   : >> { %4420 = vmatmul.mubr.msk.f32.vlgmr.msra.gmra.mrb[0].mxu0 %vm2690_vm12, %v2689_v36  ;;  %4431 = vmatmul.mubr.msk.f32.vlgmr.msra.gmra.mrb[0].mxu1 %vm2690_vm12, %v2777_v37 }
 0x714   : > { %2668 = sbr.rel (!%p2666_p4) target bundleno = 1583 (0x62f), region = 281 }
 0x716   : >> { %v4421_v38 = vpop.f32.mrb[0].mxu0  ;;  %v4432_v39 = vpop.f32.mrb[0].mxu1 }
 0x717   : >> { %v2860_v40 = vmax.f32 %v4421_v38, %v4432_v39  ;;  %v2767_v41 = vpop.f32.mrb[1].mxu0  ;;  %v2850_v42 = vpop.f32.mrb[1].mxu1 }
 0x718   : >> { %v2859_v43 = vmax.f32 %v2767_v41, %v2850_v42 }
 0x719   : >> { %2866 = vst.msk [vmem:[%s2862_s0 + $0x8] sm:$0xf] %vm2865_vm0, %v2860_v40 }
 0x71a   : >> { %2864 = vst.msk [vmem:[%s2862_s0] sm:$0xff] %vm2658_vm11, %v2859_v43 }
 0x71b LB: >> { %v2890_v44 = vld [vmem:[#allocation13 + $0x40] sm:$0xff]  ;;  %v2891_v45 = vld [vmem:[#allocation13 + $0x48] sm:$0xff]  ;;  %v2892_v49 = vld [vmem:[#allocation13 + $0x50] sm:$0xff]  ;;  %s2873_s18 = smul.u32 12, %s5556_s24  ;;  %vm3268_vm1 = vcmask 518144   ;;  %s5556_s24 = sphi %s6367_s24, %s2872_s24  }
 0x71c   : >> { %v3067_v46 = vld [vmem:[#allocation13 + $0x80] sm:$0xff]  ;;  %v4709_v47 = vpack.c.bf16 %v2891_v45, %v2890_v44  ;;  %v3068_v48 = vld [vmem:[#allocation13 + $0x88] sm:$0xff]  ;;  %v2893_v50 = vld [vmem:[#allocation13 + $0x58] sm:$0xff]  ;;  %s3265_s21 = smul.u32 11, %s5556_s24  ;;  %s2872_s24 = sadd.s32 1, %s5556_s24  }
 0x71d   : >> { %v4741_v51 = vpack.c.bf16 %v3068_v48, %v3067_v46  ;;  %v4713_v52 = vpack.c.bf16 %v2893_v50, %v2892_v49  ;;  %v3069_v53 = vld [vmem:[#allocation13 + $0x90] sm:$0xff]  ;;  %v3070_v54 = vld [vmem:[#allocation13 + $0x98] sm:$0xff]  ;;  %v2894_v55 = vld [vmem:[#allocation13 + $0x60] sm:$0xff]  ;;  %s6373_s26 = scalar_lea.vmem [#allocation5], %s2873_s18  ;;  %p2869_p12 = scmp.ge.s32.totalorder %s2872_s24, 11  }
 0x71e   : >> { %4710 = vmatprep.subr.bf16.mxu1 %v4709_v47  ;;  %v4745_v56 = vpack.c.bf16 %v3070_v54, %v3069_v53  ;;  %v2895_v57 = vld [vmem:[#allocation13 + $0x68] sm:$0xff]  ;;  %v3071_v0 = vld [vmem:[#allocation13 + $0xa0] sm:$0xff]  ;;  %v2896_v61 = vld [vmem:[#allocation13 + $0x70] sm:$0xff]  ;;  %s3266_s27 = scalar_lea.vmem [#allocation6], %s3265_s21  ;;  %s6396_s28 = smov (%p2869_p12), 0  }
 0x71f   : >> { %v3072_v1 = vld [vmem:[#allocation13 + $0xa8] sm:$0xff]  ;;  %4742 = vmatprep.subr.bf16.mxu0 %v4741_v51  ;;  %4712 = vmatpush3.bf16.msra.mxu1 %v4709_v47  ;;  %v4717_v58 = vpack.c.bf16 %v2895_v57, %v2894_v55  ;;  %v2897_v62 = vld [vmem:[#allocation13 + $0x78] sm:$0xff]  ;;  %v3073_v3 = vld [vmem:[#allocation13 + $0xb0] sm:$0xff]  ;;  %v5558_v47 = vmov (%p2869_p12), 0.0  }
 0x720   : >> { %4744 = vmatpush3.bf16.msra.mxu0 %v4741_v51  ;;  %4714 = vmatprep.subr.bf16.mxu1 %v4713_v52  ;;  %v4749_v60 = vpack.c.bf16 %v3072_v1, %v3071_v0  ;;  %v3074_v4 = vld [vmem:[#allocation13 + $0xb8] sm:$0xff]  ;;  %v4721_v5 = vpack.c.bf16 %v2897_v62, %v2896_v61  ;;  %v2877_v7 = vld [vmem:[#allocation13] sm:$0xff]  ;;  %v2878_v8 = vld [vmem:[#allocation13 + $0x8] sm:$0xff] }
 0x721   : >> { %v3917_v59 = vld [vmem:[%s6373_s26 + $0x1] sm:$0xff]  ;;  %4746 = vmatprep.subr.bf16.mxu0 %v4745_v56  ;;  %v3923_v63 = vld [vmem:[%s6373_s26 + $0xc] sm:$0xff]  ;;  %v4753_v6 = vpack.c.bf16 %v3074_v4, %v3073_v3  ;;  %v3163_v9 = vld [vmem:[#allocation13 + $0xc0] sm:$0xff]  ;;  %v4725_v12 = vpack.c.bf16 %v2878_v8, %v2877_v7 }
 0x722   : >> { %4449 = vmatprep.mubr.msk.f32.mxu1 %vm2658_vm11, %v3917_v59  ;;  %4487 = vmatprep.mubr.msk.f32.mxu0 %vm2658_vm11, %v3923_v63  ;;  %v3164_v11 = vld [vmem:[#allocation13 + $0xc8] sm:$0xff]  ;;  %v2879_v2 = vld [vmem:[#allocation13 + $0x10] sm:$0xff]  ;;  %v2880_v14 = vld [vmem:[#allocation13 + $0x18] sm:$0xff] }
 0x723   : >> { %4716 = vmatpush3.bf16.msra.mxu1 %v4713_v52  ;;  %v4757_v13 = vpack.c.bf16 %v3164_v11, %v3163_v9  ;;  %v3165_v15 = vld [vmem:[#allocation13 + $0xd0] sm:$0xff]  ;;  %v3166_v16 = vld [vmem:[#allocation13 + $0xd8] sm:$0xff]  ;;  %v3924_v18 = vld [vmem:[%s6373_s26 + $0x14] sm:$0x7]  ;;  %v4729_v19 = vpack.c.bf16 %v2880_v14, %v2879_v2 }
 0x724   : >> { %4748 = vmatpush3.bf16.msra.mxu0 %v4745_v56  ;;  %4718 = vmatprep.subr.bf16.mxu1 %v4717_v58  ;;  %v3918_v17 = vld [vmem:[%s6373_s26 + $0x9] sm:$0x7]  ;;  %v4761_v20 = vpack.c.bf16 %v3166_v16, %v3165_v15  ;;  %v2881_v21 = vld [vmem:[#allocation13 + $0x20] sm:$0xff]  ;;  %v2882_v22 = vld [vmem:[#allocation13 + $0x28] sm:$0xff] }
 0x725   : >> { %4750 = vmatprep.subr.bf16.mxu0 %v4749_v60  ;;  %v3167_v23 = vld [vmem:[#allocation13 + $0xe0] sm:$0xff]  ;;  %v3168_v24 = vld [vmem:[#allocation13 + $0xe8] sm:$0xff]  ;;  %v4733_v10 = vpack.c.bf16 %v2882_v22, %v2881_v21  ;;  %v2883_v28 = vld [vmem:[#allocation13 + $0x30] sm:$0xff] }
 0x726   : >> { %v2875_v25 = vld [vmem:[%s6373_s26] sm:$0xff]  ;;  %v3927_v26 = vld [vmem:[%s6373_s26 + $0xd] sm:$0xff]  ;;  %v4765_v27 = vpack.c.bf16 %v3168_v24, %v3167_v23  ;;  %v2876_v34 = vld [vmem:[%s6373_s26 + $0x8] sm:$0x7] }
 0x727   : >> { %4720 = vmatpush3.bf16.msra.mxu1 %v4717_v58  ;;  %v2884_v29 = vld [vmem:[#allocation13 + $0x38] sm:$0xff]  ;;  %v3169_v30 = vld [vmem:[#allocation13 + $0xf0] sm:$0xff]  ;;  %v3928_v35 = vld [vmem:[%s6373_s26 + $0x15] sm:$0x7] }
 0x728   : >> { %4752 = vmatpush3.bf16.msra.mxu0 %v4749_v60  ;;  %4722 = vmatprep.subr.bf16.mxu1 %v4721_v5  ;;  %v3170_v31 = vld [vmem:[#allocation13 + $0xf8] sm:$0xff]  ;;  %v4737_v32 = vpack.c.bf16 %v2884_v29, %v2883_v28  ;;  %v3931_v38 = vld [vmem:[#allocation15] ss:$0 sm:$0xff] }
 0x729   : >> { %4754 = vmatprep.subr.bf16.mxu0 %v4753_v6  ;;  %v4769_v33 = vpack.c.bf16 %v3170_v31, %v3169_v30 }
 0x72b   : >> { %4724 = vmatpush3.bf16.msra.mxu1 %v4721_v5 }
 0x72c   : >> { %4756 = vmatpush3.bf16.msra.mxu0 %v4753_v6  ;;  %4726 = vmatprep.subr.bf16.mxu1 %v4725_v12 }
 0x72d   : >> { %4758 = vmatprep.subr.bf16.mxu0 %v4757_v13 }
 0x72e   : >> { %4450 = vmatmul.mubr.msk.f32.vlgmr.msra.gmra.mrb[0].mxu1 %vm2658_vm11, %v3918_v17 }
 0x72f   : >> { %4728 = vmatpush3.bf16.msra.mxu1 %v4725_v12  ;;  %4488 = vmatmul.mubr.msk.f32.vlgmr.msra.gmra.mrb[0].mxu0 %vm2658_vm11, %v3924_v18 }
 0x730   : >> { %4760 = vmatpush3.bf16.msra.mxu0 %v4757_v13  ;;  %4730 = vmatprep.subr.bf16.mxu1 %v4729_v19 }
 0x731   : >> { %4762 = vmatprep.subr.bf16.mxu0 %v4761_v20  ;;  %4468 = vmatprep.mubr.msk.f32.mxu1 %vm2658_vm11, %v2875_v25 }
 0x732   : >> { %4506 = vmatprep.mubr.msk.f32.mxu0 %vm2658_vm11, %v3927_v26 }
 0x733   : >> { %4732 = vmatpush3.bf16.msra.mxu1 %v4729_v19 }
 0x734   : >> { %4764 = vmatpush3.bf16.msra.mxu0 %v4761_v20  ;;  %4734 = vmatprep.subr.bf16.mxu1 %v4733_v10 }
 0x735   : >> { %4766 = vmatprep.subr.bf16.mxu0 %v4765_v27 }
 0x737   : >> { %4736 = vmatpush3.bf16.msra.mxu1 %v4733_v10 }
 0x738   : >> { %4768 = vmatpush3.bf16.msra.mxu0 %v4765_v27  ;;  %4738 = vmatprep.subr.bf16.mxu1 %v4737_v32 }
 0x739   : >> { %4770 = vmatprep.subr.bf16.mxu0 %v4769_v33 }
 0x73b   : >> { %4740 = vmatpush3.bf16.msra.mxu1 %v4737_v32 }
 0x73c   : >> { %4772 = vmatpush3.bf16.msra.mxu0 %v4769_v33 }
 0x73e   : >> { %4469 = vmatmul.mubr.msk.f32.vlgmr.msra.gmra.mrb[0].mxu1 %vm2658_vm11, %v2876_v34 }
 0x73f   : >> { %4507 = vmatmul.mubr.msk.f32.vlgmr.msra.gmra.mrb[0].mxu0 %vm2658_vm11, %v3928_v35 }
 0x811   : >> { %v4470_v36 = vpop.f32.mrb[0].mxu1 }
 0x812   : >> { %v4508_v37 = vpop.f32.mrb[0].mxu0  ;;  %v3052_v39 = vpop.f32.mrb[1].mxu1 }
 0x813   : >> { %v4847_v40 = vadd.f32 %v4508_v37, %v4470_v36  ;;  %v3243_v41 = vpop.f32.mrb[1].mxu0 }
 0x814   : >> { %v4848_v42 = vadd.f32 %v3243_v41, %v3052_v39  ;;  %2871 = sbr.rel (!%p2869_p12) target bundleno = 1819 (0x71b), region = 292 }
 0x815   : >> { %v3262_v43 = vadd.f32 %v4847_v40, %v3931_v38 }
 0x816   : >> { %v3261_v44 = vadd.f32 %v4848_v42, %v3931_v38 }
 0x817   : >> { %v3264_v45 = vmax.f32 %v3262_v43, 0.0 }
 0x818   : >> { %v3263_v46 = vmax.f32 %v3261_v44, 0.0 }
 0x819   : >> { %3269 = vst.msk [vmem:[%s3266_s27 + $0x8] sm:$0x7] %vm3268_vm1, %v3264_v45 }
 0x81a   : >> { %3267 = vst.msk [vmem:[%s3266_s27] sm:$0xff] %vm2658_vm11, %v3263_v46 }
 0x81b LB: >> { %v5585_v48 = vmov 0.0|0.0   ;;  %vm5586_vm2 = vmmov 0   ;;  %v5587_v49 = vmov 0.0   ;;  %s3932_s30 = sshll.u32 %s5564_s28, 6  ;;  %s3277_s29 = scalar_lea.vmem [#allocation6], %s5564_s28  ;;  %s5564_s28 = sphi %s6396_s28, %s3275_s28   ;;  %v5560_v47 = vphi %v5558_v47, %v5559_v47  }
 0x81c   : >> { %4773 = vmatprep.subr.bf16.mxu0 %v5585_v48  ;;  %4525 = vmatprep.mubr.msk.f32.mxu0 %vm5586_vm2, %v5587_v49  ;;  %s3280_s4 = scalar_lea.vmem [#allocation22], %s3932_s30  ;;  %s3275_s28 = sadd.s32 1, %s5564_s28  }
 0x81d   : >> { %v3281_v50 = vld [vmem:[%s3280_s4] sm:$0xff]  ;;  %v3282_v51 = vld [vmem:[%s3280_s4 + $0x8] sm:$0xff]  ;;  %v3283_v52 = vld [vmem:[%s3280_s4 + $0x10] sm:$0xff]  ;;  %p3272_p7 = scmp.ge.s32.totalorder %s3275_s28, 121  }
 0x81e   : >> { %v4774_v53 = vpack.c.bf16 %v3282_v51, %v3281_v50  ;;  %v3284_v54 = vld [vmem:[%s3280_s4 + $0x18] sm:$0xff]  ;;  %v3285_v56 = vld [vmem:[%s3280_s4 + $0x20] sm:$0xff]  ;;  %v3286_v57 = vld [vmem:[%s3280_s4 + $0x28] sm:$0xff]  ;;  %s6575_s1 = sld [smem:[#allocation47_spill]] (%p3272_p7)  ;;  %v5588_v6 = vmov (%p3272_p7), 0.0|0.0   ;;  %vm5589_vm3 = vmmov (%p3272_p7), 0  }
 0x81f   : >> { %v4777_v55 = vpack.c.bf16 %v3284_v54, %v3283_v52  ;;  %v4780_v0 = vpack.c.bf16 %v3286_v57, %v3285_v56  ;;  %v3287_v1 = vld [vmem:[%s3280_s4 + $0x30] sm:$0xff]  ;;  %v3288_v58 = vld [vmem:[%s3280_s4 + $0x38] sm:$0xff]  ;;  %v5590_v9 = vmov (%p3272_p7), 0.0   ;;  %s6576_s0 = sld [smem:[#allocation41_spill]] (%p3272_p7)  ;;  %s3934_s24 = sshll.u32 (%p3272_p7), %s5698_s25, 4  ;;  %vm3454_vm4 = vcmask (%p3272_p7), 73728  }
 0x820   : >> { %4775 = vmatpush3.bf16.msra.mxu0 %v4774_v53  ;;  %v4783_v59 = vpack.c.bf16 %v3288_v58, %v3287_v1  ;;  %v3364_v26 = vld [vmem:[#allocation24] sm:$0x1] (%p3272_p7)  ;;  %v3383_v31 = vld [vmem:[#allocation25] sm:$0x1] (%p3272_p7)  ;;  %s3469_s18 = sshll.u32 (%p3272_p7), %s6040_s2, 4  ;;  %s6577_s27 = sld [smem:[#allocation48_spill]] (%p3272_p7)  ;;  %s6462_s18 = int_to_ptr.vmem [resolvable:$true] %s3469_s18 }
 0x821   : >> { %4776 = vmatprep.subr.bf16.mxu0 %v5585_v48  ;;  %v3278_v60 = vld [vmem:[%s3277_s29] sm:$0x1]  ;;  %s3457_s30 = scalar_lea.sflag (%p3272_p7), [#allocation9], %s677_s16  ;;  %s5418_s4 = scalar_lea.vmem (%p3272_p7), %s6462_s18, 16 }
 0x822   : > { %p5419_p8 = scmp.ne.s32.totalorder (%p3272_p7), %s6462_s18, %s5418_s4  ;;  %s5591_s25 = smov (%p3272_p7), [#allocation27]  }
 0x823   : > { %s5422_s29 = sshll.u32 (%p3272_p7), %s5591_s25, 4  ;;  %s5423_s29 = int_to_ptr.vmem [resolvable:$false] %s5422_s29 }
 0x824   : >> { %4778 = vmatpush3.bf16.msra.mxu0 %v4777_v55  ;;  %v3367_v3 = vld [vmem:[%s6575_s1] sm:$0xff] (%p3272_p7)  ;;  %v3368_v4 = vld [vmem:[%s6575_s1 + $0x8] sm:$0xff] (%p3272_p7)  ;;  %v3369_v5 = vld [vmem:[%s6575_s1 + $0x10] sm:$0xff] (%p3272_p7)  ;;  %s5424_s14 = scalar_lea.vmem (%p3272_p7), %s5423_s29, 32  ;;  %p5425_p6 = scmp.lt.s32.totalorder (%p3272_p7), %s6462_s18, %s5423_s29 }
 0x825   : >> { %4779 = vmatprep.subr.bf16.mxu0 %v5585_v48  ;;  %v4786_v7 = vpack.c.bf16 (%p3272_p7), %v3368_v4, %v3367_v3  ;;  %v3370_v8 = vld [vmem:[%s6575_s1 + $0x18] sm:$0xff] (%p3272_p7)  ;;  %v3371_v12 = vld [vmem:[%s6575_s1 + $0x20] sm:$0xff] (%p3272_p7)  ;;  %v3372_v13 = vld [vmem:[%s6575_s1 + $0x28] sm:$0xff] (%p3272_p7)  ;;  %p6578_p11 = scmp.ne.s32.totalorder (%p3272_p7), %s6576_s0, 0  ;;  %p5426_p9 = scmp.lt.s32.totalorder (%p3272_p7), %s5424_s14, %s5418_s4 }
 0x826   : > { %v4789_v11 = vpack.c.bf16 (%p3272_p7), %v3370_v8, %v3369_v5  ;;  %v4792_v2 = vpack.c.bf16 (%p3272_p7), %v3372_v13, %v3371_v12  ;;  %v3373_v14 = vld [vmem:[%s6575_s1 + $0x30] sm:$0xff] (%p3272_p7)  ;;  %v3374_v15 = vld [vmem:[%s6575_s1 + $0x38] sm:$0xff] (%p3272_p7)  ;;  %v3375_v17 = vld [vmem:[%s6575_s1 + $0x40] sm:$0xff] (%p3272_p7)  ;;  %s6460_s28 = scalar_lea.hbm (%p3272_p7), %s6577_s27, %s3934_s24 }
 0x827   : > { %v4795_v16 = vpack.c.bf16 (%p3272_p7), %v3374_v15, %v3373_v14  ;;  %v3376_v18 = vld [vmem:[%s6575_s1 + $0x48] sm:$0xff] (%p3272_p7)  ;;  %v3377_v20 = vld [vmem:[%s6575_s1 + $0x50] sm:$0xff] (%p3272_p7)  ;;  %v3378_v21 = vld [vmem:[%s6575_s1 + $0x58] sm:$0xff] (%p3272_p7)  ;;  %p5420_p13 = pnand (%p3272_p7), %p5419_p8, %p6578_p11  ;;  %p5427_p5 = por (%p3272_p7), %p5426_p9, %p5425_p6 }
 0x828   : >> { %4781 = vmatpush3.bf16.msra.mxu0 %v4780_v0  ;;  %v4798_v19 = vpack.c.bf16 (%p3272_p7), %v3376_v18, %v3375_v17  ;;  %v4801_v22 = vpack.c.bf16 (%p3272_p7), %v3378_v21, %v3377_v20  ;;  %v3379_v23 = vld [vmem:[%s6575_s1 + $0x60] sm:$0xff] (%p3272_p7)  ;;  %v3380_v24 = vld [vmem:[%s6575_s1 + $0x68] sm:$0xff] (%p3272_p7)  ;;  %v3381_v10 = vld [vmem:[%s6575_s1 + $0x70] sm:$0xff] (%p3272_p7) }
 0x829   : >> { %4782 = vmatprep.subr.bf16.mxu0 %v5585_v48  ;;  %v4804_v25 = vpack.c.bf16 (%p3272_p7), %v3380_v24, %v3379_v23  ;;  %v3382_v27 = vld [vmem:[%s6575_s1 + $0x78] sm:$0xff] (%p3272_p7)  ;;  %p5421_p1 = pneg (%p3272_p7), %p5420_p13 }
 0x82a   : > { %v4807_v29 = vpack.c.bf16 (%p3272_p7), %v3382_v27, %v3381_v10 }
 0x82b   : > { %p5428_p10 = pnand (%p3272_p7), %p5427_p5, %p5421_p1 }
 0x82c   : >> { %4784 = vmatpush3.bf16.msra.mxu0 %v4783_v59 }
 0x82d   : > { %4785 = vmatprep.subr.bf16.mxu0 (%p3272_p7), %v5588_v6 }
 0x82f   : >> { %4526 = vmatmul.mubr.msk.f32.vlgmr.msra.gmra.mrb[0].mxu0 %vm2658_vm11, %v3278_v60 }
 0x830   : > { %4560 = vmatprep.mubr.msk.f32.mxu0 (%p3272_p7), %vm5589_vm3, %v5590_v9  ;;  %4787 = vmatpush3.bf16.msra.mxu0 (%p3272_p7), %v4786_v7 }
 0x831   : > { %4788 = vmatprep.subr.bf16.mxu0 (%p3272_p7), %v5588_v6 }
 0x834   : > { %4790 = vmatpush3.bf16.msra.mxu0 (%p3272_p7), %v4789_v11 }
 0x835   : > { %4791 = vmatprep.subr.bf16.mxu0 (%p3272_p7), %v5588_v6 }
 0x838   : > { %4793 = vmatpush3.bf16.msra.mxu0 (%p3272_p7), %v4792_v2 }
 0x839   : > { %4794 = vmatprep.subr.bf16.mxu0 (%p3272_p7), %v5588_v6 }
 0x83c   : > { %4796 = vmatpush3.bf16.msra.mxu0 (%p3272_p7), %v4795_v16 }
 0x83d   : > { %4797 = vmatprep.subr.bf16.mxu0 (%p3272_p7), %v5588_v6 }
 0x840   : > { %4799 = vmatpush3.bf16.msra.mxu0 (%p3272_p7), %v4798_v19 }
 0x841   : > { %4800 = vmatprep.subr.bf16.mxu0 (%p3272_p7), %v5588_v6 }
 0x844   : > { %4802 = vmatpush3.bf16.msra.mxu0 (%p3272_p7), %v4801_v22 }
 0x845   : > { %4803 = vmatprep.subr.bf16.mxu0 (%p3272_p7), %v5588_v6 }
 0x848   : > { %4805 = vmatpush3.bf16.msra.mxu0 (%p3272_p7), %v4804_v25 }
 0x849   : > { %4806 = vmatprep.subr.bf16.mxu0 (%p3272_p7), %v5588_v6 }
 0x84c   : > { %4808 = vmatpush3.bf16.msra.mxu0 (%p3272_p7), %v4807_v29 }
 0x8ff   : > { %3274 = sbr.rel (!%p3272_p7) target bundleno = 2075 (0x81b), region = 303 }
 0x902   : >> { %v3359_v61 = vpop.f32.mrb[0].mxu0 }
 0x903   : >> { %v3363_v62 = vadd.f32 %v5560_v47, %v3359_v61   ;;  %v4527_v63 = vpop.f32.mrb[1].mxu0 }
 0x905   : >> { %v5559_v47 = vmov %v3363_v62   ;;  %v3365_v28 = vadd.f32 (%p3272_p7), %v3364_v26, %v3363_v62 }
 0x907   : > { %v3366_v30 = vmax.f32 %v3365_v28, 0.0 }
 0x909   : > { %4561 = vmatmul.mubr.f32.vlgmr.msra.gmra.mrb[0].mxu0 %v3366_v30 }
 0x9dc   : > { %v3450_v32 = vpop.f32.mrb[0].mxu0 }
 0x9dd   : > { %v3451_v33 = vadd.f32 %v3450_v32, %v3383_v31  ;;  %v4562_v34 = vpop.f32.mrb[1].mxu0 }
 0x9df   : > { %3455 = vst.msk [vmem:[%s6040_s2] sm:$0x1] %vm3454_vm4, %v3451_v33 }
 0x9e0   : > { %5431 = shalt.err (!%p5428_p10)
}
 0x9e1   : > { %s5432_s16 = scalar_lea.hbm %s6460_s28, 16  ;;  %s5436_s23 = scalar_lea.hbm %s6577_s27, 32 }
 0x9e2   : > { %p5433_p0 = scmp.ne.s32.totalorder %s6460_s28, %s5432_s16  ;;  %p5437_p4 = scmp.lt.u32.totalorder %s6460_s28, %s6577_s27 }
 0x9e3   : > { %p5438_p12 = scmp.lt.u32.totalorder %s5436_s23, %s5432_s16  ;;  %p5440_p8 = scmp.lt.u32.totalorder %s5432_s16, %s6460_s28 }
 0x9e4   : > { %p5434_p2 = pnand %p5433_p0, %p6578_p11 }
 0x9e5   : > { %p5439_p7 = por %p5438_p12, %p5437_p4 }
 0x9e6   : > { %p5435_p3 = pneg %p5434_p2 }
 0x9e7   : > { %p5441_p13 = por %p5440_p8, %p5439_p7 }
 0x9e9   : > { %p5442_p1 = pnand %p5441_p13, %p5435_p3 }
 0x9eb   : > { %5445 = shalt.err (!%p5442_p1)
}
 0x9ec   : > { %4901 = dma.vmem_to_hbm [thread:$0]  (%p6578_p11), %s6462_s18, 16, %s6460_s28, %s3457_s30  }
 0x9ed PF: > { %s6579_s26 = sld [smem:[#allocation38_spill]]  ;;  %s6580_s21 = sld [smem:[#allocation36_spill]] }
 0x9ee   : > { %s6581_s4 = sld [smem:[#allocation42_spill]] }
 0x9f3   : > { %p4968_p6 = scmp.ge.s32.totalorder %s6579_s26, 2  ;;  %s3481_s25 = sand.u32 1, %s6580_s21  }
 0x9f4   : > { %p6582_p9 = scmp.ne.s32.totalorder %s6581_s4, 0  ;;  %s3482_s29 = scalar_lea.sflag [#allocation9], %s3481_s25 }
 0x9f6   : > { %p4941_p5 = pnand %p4968_p6, %p6582_p9 }
 0x9f8   : > { %5519 = dma.done.wait (!%p4941_p5), %s3482_s29, 16  }
 0x9f9   : > { %5521 = vsyncadd (!%p4941_p5), %s3482_s29, 4294967280  ;;  %s6583_s24 = sld [smem:[#allocation39_spill]]  ;;  %s6584_s14 = sld [smem:[#allocation37_spill]] }
 0x9fa   : > { %s6585_s23 = sld [smem:[#allocation40_spill]]  ;;  %s6586_s21 = smov %s5528_s22 }
 0x9ff   : > { %p33_p10 = scmp.ge.s32.totalorder %s6583_s24, 4   ;;  %s6587_s22 = smov %s6584_s14 }
 0xa01   :  { %35 = sbr.rel (!%p33_p10) target bundleno = 17 (0x11), region = 314 }
 0xa08   :  { %3486 = vsyncpa [#allocation8], 1 }
 0xa09   :  { %3488 = vsyncpa [#allocation8 + $0x1], 1 }
 0xa0a   :  { %3489 = vsyncpa [#allocation11], 1 }
 0xa0b   :  { %3490 = vsyncpa [#allocation14], 1 }
 0xa0c   :  { %3491 = vsyncpa [#allocation17], 1 }
 0xa0d   :  { %3492 = vsyncpa [#allocation20], 1 }
 0xa0e   :  { %3493 = vsyncpa [#allocation23], 1 }
 0xa0f   :  { %3494 = vsyncpa [#allocation26], 1 }
 0xa10   :  { %3495 = vsyncpa [#allocation9], 1 }
 0xa11   :  { %3497 = vsyncpa [#allocation9 + $0x1], 1 }

</bundles_post_ra>
